<compile_context>
chip_gen: v7x
topology: tpu7x:2x2x1
jax: 0.10.0
libtpu: 0.0.40
codegen_flags: <defaults>
</compile_context>

<pallas_src>
import functools

import jax
import jax.numpy as jnp
from jax import lax
from jax.experimental import pallas as pl
from jax.experimental.pallas import tpu as pltpu
import numpy as np


# ---------------------------------------------------------------------------
# Kernel
# ---------------------------------------------------------------------------
def _linear_attention_kernel(x_ref, wqkv_ref, wout_ref, bias_ref, o_ref,
                             out_acc_ref, *, heads, dim_head, n_valid,
                             mxu_dtype):
    """One batch element of LinearAttention.

    x_ref      : [C, N]          input feature map (C=dim, N=padded h*w)
    wqkv_ref   : [3*hidden, C]   fused q/k/v 1x1 conv weight (rows: q|k|v, head-major)
    wout_ref   : [C, hidden]     output 1x1 conv weight
    bias_ref   : [C, 1]          output conv bias
    o_ref      : [C, N]          output block
    out_acc_ref: [hidden, N] f32 scratch holding per-head attention outputs
    """
    D = dim_head
    hidden = heads * D
    n_pad = x_ref.shape[-1]

    x = x_ref[...]
    wqkv = wqkv_ref[...]
    if mxu_dtype is not None:
        x = x.astype(mxu_dtype)
        wqkv = wqkv.astype(mxu_dtype)

    # (1) One fused q/k/v projection for ALL heads: [3*hidden, C] @ [C, N].
    qkv = jnp.dot(wqkv, x, preferred_element_type=jnp.float32)   # [3*hidden, N] f32

    # Hoisted loop-invariants (JAX doesn't CSE broadcasts/constants in loops).
    ones_row = jnp.ones((1, n_pad), jnp.float32)
    if mxu_dtype is not None:
        ones_row = ones_row.astype(mxu_dtype)
    if n_valid != n_pad:
        col = lax.broadcasted_iota(jnp.int32, (1, n_pad), 1)
        valid = col < n_valid
    else:
        valid = None

    # (2) Short unrolled per-head loop: f32 softmax + two small MXU matmuls.
    for h in range(heads):
        q_h = qkv[h * D:(h + 1) * D, :]
        k_h = qkv[hidden + h * D:hidden + (h + 1) * D, :]
        v_h = qkv[2 * hidden + h * D:2 * hidden + (h + 1) * D, :]

        if valid is not None:
            k_h = jnp.where(valid, k_h, -jnp.inf)      # pad columns -> exp() == 0
        ek = jnp.exp(k_h - jnp.max(k_h, axis=-1, keepdims=True))    # [D, N] f32

        if mxu_dtype is not None:
            ek_d = ek.astype(mxu_dtype)
            v_d = v_h.astype(mxu_dtype)
            q_d = q_h.astype(mxu_dtype)
        else:
            ek_d, v_d, q_d = ek, v_h, q_h

        # Deferred softmax normalization: row-sums as a [1, D] NT matmul,
        # applied as a DxD column scale on the context (not a DxN divide).
        ssum = lax.dot_general(ones_row, ek_d, (((1,), (1,)), ((), ())),
                               preferred_element_type=jnp.float32)   # [1, D]
        inv = pl.reciprocal(ssum, approx=True)                       # [1, D] (EUP)

        # ctx_t[e, d] = sum_n v[e, n] * ek[d, n]    (torch: context[d, e], unnormalized)
        ctx_t = lax.dot_general(v_d, ek_d, (((1,), (1,)), ((), ())),
                                preferred_element_type=jnp.float32)  # [D, D]
        ctx_t = ctx_t * inv
        # out_h[e, n] = sum_d context[d, e] * q[d, n]
        out_h = jnp.dot(ctx_t.astype(q_d.dtype), q_d,
                        preferred_element_type=jnp.float32)          # [D, N]
        out_acc_ref[h * D:(h + 1) * D, :] = out_h

    # (3) One fused output 1x1 conv for ALL heads: [C, hidden] @ [hidden, N] + bias.
    wout = wout_ref[...]
    out_all = out_acc_ref[...]
    if mxu_dtype is not None:
        wout = wout.astype(mxu_dtype)
        out_all = out_all.astype(mxu_dtype)
    y = jnp.dot(wout, out_all, preferred_element_type=jnp.float32)   # [C, N] f32
    o_ref[...] = (bias_ref[...] + y).astype(o_ref.dtype)


# ---------------------------------------------------------------------------
# Wrappers (PyTorch LinearAttention.forward semantics, NCHW in / NCHW out)
# ---------------------------------------------------------------------------
def prepare_linear_attention_params(params, *, dim, heads=4, dim_head=32):
    """Hoist the batch-invariant weight re-layout out of the forward path."""
    hidden = heads * dim_head
    return {
        # torch Conv2d(dim, 3*hidden, 1, bias=False): [3*hidden, dim, 1, 1];
        # channels already ordered (qkv, heads, dim_head) -> flat works directly.
        "wqkv": params["to_qkv_weight"].reshape(3 * hidden, dim),
        # torch Conv2d(hidden, dim, 1): [dim, hidden, 1, 1]; hidden ordered (heads, D).
        "wout": params["to_out_weight"].reshape(dim, hidden),
        "bias": params["to_out_bias"].reshape(dim, 1),
    }


def linear_attention(x_nchw, prepared, *, heads=4, dim_head=32, mxu_dtype=None):
    b, c, h, w = x_nchw.shape
    n = h * w
    hidden = heads * dim_head
    n_pad = ((n + 127) // 128) * 128       # lane-dense loads/stores (unmasked vst)

    x = x_nchw.reshape(b, c, n)
    if n_pad != n:
        x = jnp.pad(x, ((0, 0), (0, 0), (0, n_pad - n)))

    kernel = functools.partial(
        _linear_attention_kernel,
        heads=heads, dim_head=dim_head, n_valid=n, mxu_dtype=mxu_dtype)

    # Scoped-VMEM limit sized to the actual working set (defaults are 16-32 MiB),
    # capped so it stays within v7x's 64 MiB physical VMEM.
    per_step = 4 * n_pad * (4 * c + 6 * hidden) + 4 * (4 * hidden * c + c)
    vmem_limit = int(min(64 * 2 ** 20, max(32 * 2 ** 20, 2 * per_step)))

    out = pl.pallas_call(
        kernel,
        out_shape=jax.ShapeDtypeStruct((b, c, n_pad), x_nchw.dtype),
        grid_spec=pltpu.PrefetchScalarGridSpec(
            num_scalar_prefetch=0,
            grid=(b,),
            in_specs=[
                pl.BlockSpec((None, c, n_pad), lambda bi: (bi, 0, 0)),   # x
                pl.BlockSpec((3 * hidden, c), lambda bi: (0, 0)),        # wqkv
                pl.BlockSpec((c, hidden), lambda bi: (0, 0)),            # wout
                pl.BlockSpec((c, 1), lambda bi: (0, 0)),                 # bias
            ],
            out_specs=pl.BlockSpec((None, c, n_pad), lambda bi: (bi, 0, 0)),
            scratch_shapes=[pltpu.VMEM((hidden, n_pad), jnp.float32)],
        ),
        compiler_params=pltpu.CompilerParams(
            dimension_semantics=("parallel",),
            vmem_limit_bytes=vmem_limit),
    )(x, prepared["wqkv"], prepared["wout"], prepared["bias"])

    if n_pad != n:
        out = out[..., :n]
    return out.reshape(b, c, h, w)


# ---------------------------------------------------------------------------
# Pure-JAX reference for verification
# ---------------------------------------------------------------------------
def _ref_linear_attention(x, params, *, heads=4, dim_head=32):
    b, c, h, w = x.shape
    n = h * w
    hidden = heads * dim_head
    hp = lax.Precision.HIGHEST

    wqkv = params["to_qkv_weight"].reshape(3 * hidden, c)
    qkv = jnp.einsum("oc,bcn->bon", wqkv, x.reshape(b, c, n), precision=hp)
    qkv = qkv.reshape(b, 3, heads, dim_head, n)
    q, k, v = qkv[:, 0], qkv[:, 1], qkv[:, 2]            # [b, heads, D, n]
    k = jax.nn.softmax(k, axis=-1)
    context = jnp.einsum("bhdn,bhen->bhde", k, v, precision=hp)
    out = jnp.einsum("bhde,bhdn->bhen", context, q, precision=hp)
    out = out.reshape(b, hidden, n)
    wout = params["to_out_weight"].reshape(c, hidden)
    y = jnp.einsum("oc,bcn->bon", wout, out, precision=hp)
    y = y + params["to_out_bias"][None, :, None]
    return y.reshape(b, c, h, w)


# ---------------------------------------------------------------------------
if __name__ == "__main__":
    key = jax.random.PRNGKey(0)
    kx, kqkv, kow, kob = jax.random.split(key, 4)

    B, DIM, H, W = 2, 4, 16, 16
    HEADS, DIM_HEAD = 4, 32
    HIDDEN = HEADS * DIM_HEAD

    x = jax.random.normal(kx, (B, DIM, H, W), jnp.float32)

    # Conv2d weights in torch layout [out, in, 1, 1]
    bq = 1.0 / np.sqrt(DIM)
    bo = 1.0 / np.sqrt(HIDDEN)
    params = {
        "to_qkv_weight": jax.random.uniform(
            kqkv, (3 * HIDDEN, DIM, 1, 1), jnp.float32, -bq, bq),
        "to_out_weight": jax.random.uniform(
            kow, (DIM, HIDDEN, 1, 1), jnp.float32, -bo, bo),
        "to_out_bias": jax.random.uniform(
            kob, (DIM,), jnp.float32, -bo, bo),
    }

    prepared = prepare_linear_attention_params(
        params, dim=DIM, heads=HEADS, dim_head=DIM_HEAD)

    # f32 path: compared against the high-precision reference.
    y = jax.block_until_ready(
        linear_attention(x, prepared, heads=HEADS, dim_head=DIM_HEAD))
    assert y.shape == (B, DIM, H, W), y.shape

    y_ref = _ref_linear_attention(x, params, heads=HEADS, dim_head=DIM_HEAD)
    # Tolerance allows for pl.reciprocal(approx=True) in the deferred softmax scale.
    np.testing.assert_allclose(np.asarray(y), np.asarray(y_ref),
                               rtol=1e-2, atol=1e-2)

    # bf16-MXU-operand path (softmax math stays f32): smoke-test that it runs.
    y_bf16 = jax.block_until_ready(
        linear_attention(x, prepared, heads=HEADS, dim_head=DIM_HEAD,
                         mxu_dtype=jnp.bfloat16))
    assert y_bf16.shape == (B, DIM, H, W)
    assert bool(jnp.all(jnp.isfinite(y_bf16)))

    print("KERNEL_OK")
</pallas_src>

<mosaic_0001>
module attributes {stable_mosaic.version = 11 : i64} {
  func.func @_linear_attention_kernel(%arg0: i32, %arg1: memref<1x4x256xf32, #tpu.memory_space<vmem>>, %arg2: memref<384x4xf32, #tpu.memory_space<vmem>>, %arg3: memref<4x128xf32, #tpu.memory_space<vmem>>, %arg4: memref<4x1xf32, #tpu.memory_space<vmem>>, %arg5: memref<1x4x256xf32, #tpu.memory_space<vmem>>, %arg6: memref<128x256xf32, #tpu.memory_space<vmem>>) attributes {dimension_semantics = [#tpu.dimension_semantics<parallel>], iteration_bounds = array<i64: 2>, scalar_prefetch = 0 : i64, scratch_operands = 1 : i64, tpu.core_type = #tpu.core_type<tc>, window_params = [{transform_indices = @transform_0, window_bounds = array<i64: 1, 4, 256>}, {pipeline_mode = #tpu.pipeline_mode<synchronous>, transform_indices = @transform_1, window_bounds = array<i64: 384, 4>}, {pipeline_mode = #tpu.pipeline_mode<synchronous>, transform_indices = @transform_2, window_bounds = array<i64: 4, 128>}, {pipeline_mode = #tpu.pipeline_mode<synchronous>, transform_indices = @transform_3, window_bounds = array<i64: 4, 1>}, {transform_indices = @transform_4, window_bounds = array<i64: 1, 4, 256>}]} {
    %c0 = arith.constant 0 : index
    %c0_0 = arith.constant 0 : index
    %c0_1 = arith.constant 0 : index
    %0 = vector.load %arg1[%c0, %c0_0, %c0_1] : memref<1x4x256xf32, #tpu.memory_space<vmem>>, vector<1x4x256xf32>
    %1 = vector.shape_cast %0 : vector<1x4x256xf32> to vector<4x256xf32>
    %c0_2 = arith.constant 0 : index
    %c0_3 = arith.constant 0 : index
    %2 = vector.load %arg2[%c0_2, %c0_3] : memref<384x4xf32, #tpu.memory_space<vmem>>, vector<384x4xf32>
    %cst = arith.constant dense<0.000000e+00> : vector<384x256xf32>
    %3 = tpu.matmul %2, %1, %cst {dimension_numbers = #tpu.dot_dimension_numbers<[1], [0], [0], [1], [0, 0, 1, 1], [], []>} : vector<384x4xf32>, vector<4x256xf32>, vector<384x256xf32> -> vector<384x256xf32>
    %cst_4 = arith.constant 1.000000e+00 : f32
    %4 = vector.broadcast %cst_4 : f32 to vector<1x256xf32>
    %5 = vector.extract_strided_slice %3 {offsets = [0, 0], sizes = [32, 256], strides = [1, 1]} : vector<384x256xf32> to vector<32x256xf32>
    %6 = vector.extract_strided_slice %3 {offsets = [128, 0], sizes = [32, 256], strides = [1, 1]} : vector<384x256xf32> to vector<32x256xf32>
    %7 = vector.extract_strided_slice %3 {offsets = [256, 0], sizes = [32, 256], strides = [1, 1]} : vector<384x256xf32> to vector<32x256xf32>
    %cst_5 = arith.constant dense<0xFF800000> : vector<32xf32>
    %8 = vector.multi_reduction <maximumf>, %6, %cst_5 [1] : vector<32x256xf32> to vector<32xf32>
    %9 = vector.shape_cast %8 : vector<32xf32> to vector<32x1xf32>
    %10 = vector.broadcast %9 : vector<32x1xf32> to vector<32x256xf32>
    %11 = arith.subf %6, %10 : vector<32x256xf32>
    %12 = math.exp %11 : vector<32x256xf32>
    %cst_6 = arith.constant dense<0.000000e+00> : vector<1x32xf32>
    %13 = tpu.matmul %4, %12, %cst_6 {dimension_numbers = #tpu.dot_dimension_numbers<[1], [1], [0], [0], [0, 0, 1, 0], [], []>} : vector<1x256xf32>, vector<32x256xf32>, vector<1x32xf32> -> vector<1x32xf32>
    %14 = tpu.reciprocal %13 {approx = true} : vector<1x32xf32> -> vector<1x32xf32>
    %cst_7 = arith.constant dense<0.000000e+00> : vector<32x32xf32>
    %15 = tpu.matmul %7, %12, %cst_7 {dimension_numbers = #tpu.dot_dimension_numbers<[1], [1], [0], [0], [0, 0, 1, 0], [], []>} : vector<32x256xf32>, vector<32x256xf32>, vector<32x32xf32> -> vector<32x32xf32>
    %16 = vector.broadcast %14 : vector<1x32xf32> to vector<32x32xf32>
    %17 = arith.mulf %15, %16 : vector<32x32xf32>
    %cst_8 = arith.constant dense<0.000000e+00> : vector<32x256xf32>
    %18 = tpu.matmul %17, %5, %cst_8 {dimension_numbers = #tpu.dot_dimension_numbers<[1], [0], [0], [1], [0, 0, 1, 1], [], []>} : vector<32x32xf32>, vector<32x256xf32>, vector<32x256xf32> -> vector<32x256xf32>
    %c0_9 = arith.constant 0 : index
    %c0_10 = arith.constant 0 : index
    %19 = vector.load %arg6[%c0_9, %c0_10] : memref<128x256xf32, #tpu.memory_space<vmem>>, vector<32x256xf32>
    tpu.vector_store %arg6[%c0_9, %c0_10], %18 {strides = array<i32>} : memref<128x256xf32, #tpu.memory_space<vmem>>, vector<32x256xf32>,
    %20 = vector.extract_strided_slice %3 {offsets = [32, 0], sizes = [32, 256], strides = [1, 1]} : vector<384x256xf32> to vector<32x256xf32>
    %21 = vector.extract_strided_slice %3 {offsets = [160, 0], sizes = [32, 256], strides = [1, 1]} : vector<384x256xf32> to vector<32x256xf32>
    %22 = vector.extract_strided_slice %3 {offsets = [288, 0], sizes = [32, 256], strides = [1, 1]} : vector<384x256xf32> to vector<32x256xf32>
    %cst_11 = arith.constant dense<0xFF800000> : vector<32xf32>
    %23 = vector.multi_reduction <maximumf>, %21, %cst_11 [1] : vector<32x256xf32> to vector<32xf32>
    %24 = vector.shape_cast %23 : vector<32xf32> to vector<32x1xf32>
    %25 = vector.broadcast %24 : vector<32x1xf32> to vector<32x256xf32>
    %26 = arith.subf %21, %25 : vector<32x256xf32>
    %27 = math.exp %26 : vector<32x256xf32>
    %cst_12 = arith.constant dense<0.000000e+00> : vector<1x32xf32>
    %28 = tpu.matmul %4, %27, %cst_12 {dimension_numbers = #tpu.dot_dimension_numbers<[1], [1], [0], [0], [0, 0, 1, 0], [], []>} : vector<1x256xf32>, vector<32x256xf32>, vector<1x32xf32> -> vector<1x32xf32>
    %29 = tpu.reciprocal %28 {approx = true} : vector<1x32xf32> -> vector<1x32xf32>
    %cst_13 = arith.constant dense<0.000000e+00> : vector<32x32xf32>
    %30 = tpu.matmul %22, %27, %cst_13 {dimension_numbers = #tpu.dot_dimension_numbers<[1], [1], [0], [0], [0, 0, 1, 0], [], []>} : vector<32x256xf32>, vector<32x256xf32>, vector<32x32xf32> -> vector<32x32xf32>
    %31 = vector.broadcast %29 : vector<1x32xf32> to vector<32x32xf32>
    %32 = arith.mulf %30, %31 : vector<32x32xf32>
    %cst_14 = arith.constant dense<0.000000e+00> : vector<32x256xf32>
    %33 = tpu.matmul %32, %20, %cst_14 {dimension_numbers = #tpu.dot_dimension_numbers<[1], [0], [0], [1], [0, 0, 1, 1], [], []>} : vector<32x32xf32>, vector<32x256xf32>, vector<32x256xf32> -> vector<32x256xf32>
    %c32 = arith.constant 32 : index
    %c0_15 = arith.constant 0 : index
    %34 = vector.load %arg6[%c32, %c0_15] : memref<128x256xf32, #tpu.memory_space<vmem>>, vector<32x256xf32>
    tpu.vector_store %arg6[%c32, %c0_15], %33 {strides = array<i32>} : memref<128x256xf32, #tpu.memory_space<vmem>>, vector<32x256xf32>,
    %35 = vector.extract_strided_slice %3 {offsets = [64, 0], sizes = [32, 256], strides = [1, 1]} : vector<384x256xf32> to vector<32x256xf32>
    %36 = vector.extract_strided_slice %3 {offsets = [192, 0], sizes = [32, 256], strides = [1, 1]} : vector<384x256xf32> to vector<32x256xf32>
    %37 = vector.extract_strided_slice %3 {offsets = [320, 0], sizes = [32, 256], strides = [1, 1]} : vector<384x256xf32> to vector<32x256xf32>
    %cst_16 = arith.constant dense<0xFF800000> : vector<32xf32>
    %38 = vector.multi_reduction <maximumf>, %36, %cst_16 [1] : vector<32x256xf32> to vector<32xf32>
    %39 = vector.shape_cast %38 : vector<32xf32> to vector<32x1xf32>
    %40 = vector.broadcast %39 : vector<32x1xf32> to vector<32x256xf32>
    %41 = arith.subf %36, %40 : vector<32x256xf32>
    %42 = math.exp %41 : vector<32x256xf32>
    %cst_17 = arith.constant dense<0.000000e+00> : vector<1x32xf32>
    %43 = tpu.matmul %4, %42, %cst_17 {dimension_numbers = #tpu.dot_dimension_numbers<[1], [1], [0], [0], [0, 0, 1, 0], [], []>} : vector<1x256xf32>, vector<32x256xf32>, vector<1x32xf32> -> vector<1x32xf32>
    %44 = tpu.reciprocal %43 {approx = true} : vector<1x32xf32> -> vector<1x32xf32>
    %cst_18 = arith.constant dense<0.000000e+00> : vector<32x32xf32>
    %45 = tpu.matmul %37, %42, %cst_18 {dimension_numbers = #tpu.dot_dimension_numbers<[1], [1], [0], [0], [0, 0, 1, 0], [], []>} : vector<32x256xf32>, vector<32x256xf32>, vector<32x32xf32> -> vector<32x32xf32>
    %46 = vector.broadcast %44 : vector<1x32xf32> to vector<32x32xf32>
    %47 = arith.mulf %45, %46 : vector<32x32xf32>
    %cst_19 = arith.constant dense<0.000000e+00> : vector<32x256xf32>
    %48 = tpu.matmul %47, %35, %cst_19 {dimension_numbers = #tpu.dot_dimension_numbers<[1], [0], [0], [1], [0, 0, 1, 1], [], []>} : vector<32x32xf32>, vector<32x256xf32>, vector<32x256xf32> -> vector<32x256xf32>
    %c64 = arith.constant 64 : index
    %c0_20 = arith.constant 0 : index
    %49 = vector.load %arg6[%c64, %c0_20] : memref<128x256xf32, #tpu.memory_space<vmem>>, vector<32x256xf32>
    tpu.vector_store %arg6[%c64, %c0_20], %48 {strides = array<i32>} : memref<128x256xf32, #tpu.memory_space<vmem>>, vector<32x256xf32>,
    %50 = vector.extract_strided_slice %3 {offsets = [96, 0], sizes = [32, 256], strides = [1, 1]} : vector<384x256xf32> to vector<32x256xf32>
    %51 = vector.extract_strided_slice %3 {offsets = [224, 0], sizes = [32, 256], strides = [1, 1]} : vector<384x256xf32> to vector<32x256xf32>
    %52 = vector.extract_strided_slice %3 {offsets = [352, 0], sizes = [32, 256], strides = [1, 1]} : vector<384x256xf32> to vector<32x256xf32>
    %cst_21 = arith.constant dense<0xFF800000> : vector<32xf32>
    %53 = vector.multi_reduction <maximumf>, %51, %cst_21 [1] : vector<32x256xf32> to vector<32xf32>
    %54 = vector.shape_cast %53 : vector<32xf32> to vector<32x1xf32>
    %55 = vector.broadcast %54 : vector<32x1xf32> to vector<32x256xf32>
    %56 = arith.subf %51, %55 : vector<32x256xf32>
    %57 = math.exp %56 : vector<32x256xf32>
    %cst_22 = arith.constant dense<0.000000e+00> : vector<1x32xf32>
    %58 = tpu.matmul %4, %57, %cst_22 {dimension_numbers = #tpu.dot_dimension_numbers<[1], [1], [0], [0], [0, 0, 1, 0], [], []>} : vector<1x256xf32>, vector<32x256xf32>, vector<1x32xf32> -> vector<1x32xf32>
    %59 = tpu.reciprocal %58 {approx = true} : vector<1x32xf32> -> vector<1x32xf32>
    %cst_23 = arith.constant dense<0.000000e+00> : vector<32x32xf32>
    %60 = tpu.matmul %52, %57, %cst_23 {dimension_numbers = #tpu.dot_dimension_numbers<[1], [1], [0], [0], [0, 0, 1, 0], [], []>} : vector<32x256xf32>, vector<32x256xf32>, vector<32x32xf32> -> vector<32x32xf32>
    %61 = vector.broadcast %59 : vector<1x32xf32> to vector<32x32xf32>
    %62 = arith.mulf %60, %61 : vector<32x32xf32>
    %cst_24 = arith.constant dense<0.000000e+00> : vector<32x256xf32>
    %63 = tpu.matmul %62, %50, %cst_24 {dimension_numbers = #tpu.dot_dimension_numbers<[1], [0], [0], [1], [0, 0, 1, 1], [], []>} : vector<32x32xf32>, vector<32x256xf32>, vector<32x256xf32> -> vector<32x256xf32>
    %c96 = arith.constant 96 : index
    %c0_25 = arith.constant 0 : index
    %64 = vector.load %arg6[%c96, %c0_25] : memref<128x256xf32, #tpu.memory_space<vmem>>, vector<32x256xf32>
    tpu.vector_store %arg6[%c96, %c0_25], %63 {strides = array<i32>} : memref<128x256xf32, #tpu.memory_space<vmem>>, vector<32x256xf32>,
    %c0_26 = arith.constant 0 : index
    %c0_27 = arith.constant 0 : index
    %65 = vector.load %arg3[%c0_26, %c0_27] : memref<4x128xf32, #tpu.memory_space<vmem>>, vector<4x128xf32>
    %c0_28 = arith.constant 0 : index
    %c0_29 = arith.constant 0 : index
    %66 = vector.load %arg6[%c0_28, %c0_29] : memref<128x256xf32, #tpu.memory_space<vmem>>, vector<128x256xf32>
    %cst_30 = arith.constant dense<0.000000e+00> : vector<4x256xf32>
    %67 = tpu.matmul %65, %66, %cst_30 {dimension_numbers = #tpu.dot_dimension_numbers<[1], [0], [0], [1], [0, 0, 1, 1], [], []>} : vector<4x128xf32>, vector<128x256xf32>, vector<4x256xf32> -> vector<4x256xf32>
    %c0_31 = arith.constant 0 : index
    %c0_32 = arith.constant 0 : index
    %68 = vector.load %arg4[%c0_31, %c0_32] : memref<4x1xf32, #tpu.memory_space<vmem>>, vector<4x1xf32>
    %69 = vector.broadcast %68 : vector<4x1xf32> to vector<4x256xf32>
    %70 = arith.addf %69, %67 : vector<4x256xf32>
    %c0_33 = arith.constant 0 : index
    %c0_34 = arith.constant 0 : index
    %c0_35 = arith.constant 0 : index
    %71 = vector.load %arg5[%c0_33, %c0_34, %c0_35] : memref<1x4x256xf32, #tpu.memory_space<vmem>>, vector<1x4x256xf32>
    %72 = vector.shape_cast %71 : vector<1x4x256xf32> to vector<4x256xf32>
    %73 = vector.shape_cast %70 : vector<4x256xf32> to vector<1x4x256xf32>
    tpu.vector_store %arg5[%c0_33, %c0_34, %c0_35], %73 {strides = array<i32>} : memref<1x4x256xf32, #tpu.memory_space<vmem>>, vector<1x4x256xf32>,
    return
  }
  func.func @transform_0(%arg0: i32) -> (i32, i32, i32) {
    %c0_i32 = arith.constant 0 : i32
    %c0_i32_0 = arith.constant 0 : i32
    %c0_i32_1 = arith.constant 0 : i32
    return %arg0, %c0_i32, %c0_i32_0 : i32, i32, i32
  }
  func.func @transform_1(%arg0: i32) -> (i32, i32) {
    %c0_i32 = arith.constant 0 : i32
    %c0_i32_0 = arith.constant 0 : i32
    %c0_i32_1 = arith.constant 0 : i32
    return %c0_i32, %c0_i32_0 : i32, i32
  }
  func.func @transform_2(%arg0: i32) -> (i32, i32) {
    %c0_i32 = arith.constant 0 : i32
    %c0_i32_0 = arith.constant 0 : i32
    %c0_i32_1 = arith.constant 0 : i32
    return %c0_i32, %c0_i32_0 : i32, i32
  }
  func.func @transform_3(%arg0: i32) -> (i32, i32) {
    %c0_i32 = arith.constant 0 : i32
    %c0_i32_0 = arith.constant 0 : i32
    %c0_i32_1 = arith.constant 0 : i32
    return %c0_i32, %c0_i32_0 : i32, i32
  }
  func.func @transform_4(%arg0: i32) -> (i32, i32, i32) {
    %c0_i32 = arith.constant 0 : i32
    %c0_i32_0 = arith.constant 0 : i32
    %c0_i32_1 = arith.constant 0 : i32
    return %arg0, %c0_i32, %c0_i32_0 : i32, i32, i32
  }
}

</mosaic_0001>

<bundles_post_ra>
// kernel: tpu_custom_call.1
= control target key start
LH: loop header
LB: loop body
LE: loop exit
PB: predicated region body
PF: predicated region fallthrough
CT: control target
= control target key end

     0   :  { %9 = vsyncpa [#allocation4], 0  ;;  %s3356_s0 = inlined_call_operand.vmem [shape: f32[2,4,256], index: 0, kind: input, shape index: {}]   ;;  %s3357_s1 = inlined_call_operand.vmem [shape: f32[384,4], index: 1, kind: input, shape index: {}]   ;;  %s3358_s2 = inlined_call_operand.vmem [shape: f32[4,128], index: 2, kind: input, shape index: {}]   ;;  %s3359_s3 = inlined_call_operand.vmem [shape: f32[4,1], index: 3, kind: input, shape index: {}]   ;;  %s3360_s4 = inlined_call_operand.hbm [shape: f32[2,4,256], index: 4, kind: output, shape index: {}]  }
   0x1   :  { %11 = vsyncpa [#allocation4 + $0x1], 0  ;;  %s2595_s15 = smov 0   ;;  %s2597_s16 = smov 0  }
   0x2   :  { %s2599_s17 = smov 0   ;;  %s2601_s18 = smov 0  }
   0x3 LB: > { %s2616_s19 = sadd.s32 4294967295, %s2564_s18   ;;  %s2178_s20 = sadd.s32 4294967294, %s2564_s18   ;;  %s2564_s18 = sphi %s2601_s18, %s3454_s18   ;;  %s2560_s17 = sphi %s2599_s17, %s3453_s17   ;;  %s2556_s16 = sphi %s2597_s16, %s3452_s16   ;;  %s2552_s15 = sphi %s2595_s15, %s3451_s15  }
   0x4   : > { %s2620_s21 = sadd.s32 1, %s2564_s18   ;;  %s113_s22 = sadd.s32 1, %s2560_s17 }
   0x5   : > { %s110_s23 = ssub.s32 %s2564_s18, %s2620_s21  ;;  %p123_p0 = scmp.ne.s32.totalorder %s2560_s17, %s2556_s16 }
   0x6   : > { %p111_p1 = scmp.eq.s32.totalorder %s110_s23, 0  ;;  %p124_p2 = scmp.eq.s32.totalorder %s2616_s19, 1 }
   0x7   : > { %p129_p3 = scmp.ne.s32.totalorder %s2556_s16, %s2552_s15  ;;  %p130_p4 = scmp.eq.s32.totalorder %s2178_s20, 1 }
   0x8   : > { %s2631_s24 = scalar_select %p111_p1, %s2560_s17, %s113_s22  }
   0x9   : > { %p2633_p5 = por %p124_p2, %p123_p0  ;;  %p2637_p6 = por %p130_p4, %p129_p3 }
   0xa   : > { %p2181_p7 = scmp.ge.s32.totalorder %s2564_s18, 1  ;;  %p165_p8 = scmp.lt.s32.totalorder %s2564_s18, 3 }
   0xc   : > { %p166_p9 = pnand %p2181_p7, %p165_p8 }
   0xe   : > { %169 = sbr.rel (%p166_p9) target bundleno = 1921 (0x781), region = 36 }
  0x15   : > { %p191_p10 = scmp.lt.s32.totalorder %s2616_s19, 1  ;;  %v3361_v0 = vmov 0.0   ;;  %vm392_vm0 = vcmask 1043456   ;;  %v197_v3 = vld [vmem:[%s3357_s1] sm:$0xff]  ;;  %vm247_vm1 = vcmask 31744   ;;  %v198_v4 = vld [vmem:[%s3357_s1 + $0x8] sm:$0xff] }
  0x16   : > { %461 = vmatprep.mubr.f32.mxu0 %v3361_v0  ;;  %v199_v5 = vld [vmem:[%s3357_s1 + $0x10] sm:$0xff]  ;;  %v200_v6 = vld [vmem:[%s3357_s1 + $0x18] sm:$0xff]  ;;  %v201_v7 = vld [vmem:[%s3357_s1 + $0x20] sm:$0xff]  ;;  %vm950_vm2 = vcmask 261120   ;;  %s188_s30 = sand.u32 1, %s2556_s16   ;;  %s2257_s6 = sshll.u32 %s2616_s19, 7 }
  0x17   : > { %s192_s27 = scalar_select %p191_p10, %s2616_s19, 1  ;;  %v202_v8 = vld [vmem:[%s3357_s1 + $0x28] sm:$0xff]  ;;  %v203_v9 = vld [vmem:[%s3357_s1 + $0x30] sm:$0xff]  ;;  %v204_v10 = vld [vmem:[%s3357_s1 + $0x38] sm:$0xff] }
  0x18   : > { %v205_v11 = vld [vmem:[%s3357_s1 + $0x40] sm:$0xff]  ;;  %v206_v12 = vld [vmem:[%s3357_s1 + $0x48] sm:$0xff]  ;;  %v207_v13 = vld [vmem:[%s3357_s1 + $0x50] sm:$0xff]  ;;  %s3314_s11 = scalar_lea.hbm %s3360_s4, %s2257_s6  ;;  %s2105_s12 = scalar_lea.sflag [#allocation4], %s188_s30 }
  0x19   : > { %s2256_s28 = sshll.u32 %s192_s27, 3  ;;  %v208_v14 = vld [vmem:[%s3357_s1 + $0x58] sm:$0xff]  ;;  %v209_v15 = vld [vmem:[%s3357_s1 + $0x60] sm:$0xff]  ;;  %v210_v16 = vld [vmem:[%s3357_s1 + $0x68] sm:$0xff]  ;;  %s2569_s19 = smov [#allocation3]  }
  0x1a   : > { %s195_s5 = scalar_lea.vmem %s3356_s0, %s2256_s28  ;;  %v211_v17 = vld [vmem:[%s3357_s1 + $0x70] sm:$0xff]  ;;  %v212_v18 = vld [vmem:[%s3357_s1 + $0x78] sm:$0xff]  ;;  %v213_v19 = vld [vmem:[%s3357_s1 + $0x80] sm:$0xff]  ;;  %s2506_s14 = sshll.u32 %s2569_s19, 4  ;;  %s2507_s14 = int_to_ptr.vmem [resolvable:$false] %s2506_s14 }
  0x1b   : > { %v196_v1 = vld [vmem:[%s195_s5] sm:$0xff]  ;;  %v214_v20 = vld [vmem:[%s3357_s1 + $0x88] sm:$0xff]  ;;  %v215_v21 = vld [vmem:[%s3357_s1 + $0x90] sm:$0xff]  ;;  %s2182_s5 = sshll.u32 %s188_s30, 3  ;;  %s2508_s20 = scalar_lea.vmem %s2507_s14, 256 }
  0x1c   : > { %v246_v2 = vcombine.high %v196_v1, %v196_v1  ;;  %v216_v22 = vld [vmem:[%s3357_s1 + $0x98] sm:$0xff]  ;;  %v217_v23 = vld [vmem:[%s3357_s1 + $0xa0] sm:$0xff]  ;;  %v218_v24 = vld [vmem:[%s3357_s1 + $0xa8] sm:$0xff]  ;;  %s190_s7 = scalar_lea.vmem [#allocation3], %s2182_s5 }
  0x1d   : > { %v219_v25 = vld [vmem:[%s3357_s1 + $0xb0] sm:$0xff]  ;;  %v220_v26 = vld [vmem:[%s3357_s1 + $0xb8] sm:$0xff]  ;;  %v221_v27 = vld [vmem:[%s3357_s1 + $0xc0] sm:$0xff]  ;;  %s2119_s8 = sshll.u32 %s190_s7, 4  ;;  %s3316_s8 = int_to_ptr.vmem [resolvable:$true] %s2119_s8 }
  0x1e   : > { %2185 = vmatprep.subr.msk.mxu0 %vm392_vm0, %v246_v2  ;;  %v222_v28 = vld [vmem:[%s3357_s1 + $0xc8] sm:$0xff]  ;;  %v223_v29 = vld [vmem:[%s3357_s1 + $0xd0] sm:$0xff]  ;;  %v224_v30 = vld [vmem:[%s3357_s1 + $0xd8] sm:$0xff]  ;;  %s2502_s13 = scalar_lea.vmem %s3316_s8, 128  ;;  %p2509_p0 = scmp.lt.s32.totalorder %s3316_s8, %s2507_s14 }
  0x1f   : > { %2186 = vmatpush1.msk.msra.mxu0 %vm392_vm0, %v196_v1  ;;  %v225_v31 = vld [vmem:[%s3357_s1 + $0xe0] sm:$0xff]  ;;  %v226_v32 = vld [vmem:[%s3357_s1 + $0xe8] sm:$0xff]  ;;  %v227_v33 = vld [vmem:[%s3357_s1 + $0xf0] sm:$0xff]  ;;  %p2503_p11 = scmp.ne.s32.totalorder %s3316_s8, %s2502_s13  ;;  %p2510_p1 = scmp.lt.s32.totalorder %s2508_s20, %s2502_s13 }
  0x20   : > { %2187 = vmatmul.mubr.msk.f32.vlgmr.msra.gmra.mrb[0].mxu0 %vm247_vm1, %v197_v3  ;;  %v228_v34 = vld [vmem:[%s3357_s1 + $0xf8] sm:$0xff]  ;;  %v229_v35 = vld [vmem:[%s3357_s1 + $0x100] sm:$0xff]  ;;  %v230_v36 = vld [vmem:[%s3357_s1 + $0x108] sm:$0xff] }
  0x21   : > { %467 = vmatprep.mubr.f32.mxu0 %v3361_v0  ;;  %v231_v37 = vld [vmem:[%s3357_s1 + $0x110] sm:$0xff]  ;;  %v232_v38 = vld [vmem:[%s3357_s1 + $0x118] sm:$0xff]  ;;  %p2504_p12 = pnand %p2503_p11, %p2633_p5  ;;  %p2511_p2 = por %p2510_p1, %p2509_p0 }
  0x23   : > { %p2505_p13 = pneg %p2504_p12 }
  0x24   : > { %2188 = vmatmul.mubr.msk.f32.gmra.mrb[2].mxu0 %vm247_vm1, %v198_v4 }
  0x25   : > { %473 = vmatprep.mubr.f32.mxu0 %v3361_v0  ;;  %p2512_p3 = pnand %p2511_p2, %p2505_p13 }
  0x28   : > { %2189 = vmatmul.mubr.msk.f32.gmra.mrb[4].mxu0 %vm247_vm1, %v199_v5 }
  0x29   : > { %479 = vmatprep.mubr.f32.mxu0 %v3361_v0 }
  0x2c   : > { %2190 = vmatmul.mubr.msk.f32.gmra.mrb[6].mxu0 %vm247_vm1, %v200_v6 }
  0x2d   : > { %485 = vmatprep.mubr.f32.mxu0 %v3361_v0 }
  0x30   : > { %2191 = vmatmul.mubr.msk.f32.gmra.mrb[8].mxu0 %vm247_vm1, %v201_v7 }
  0x31   : > { %491 = vmatprep.mubr.f32.mxu0 %v3361_v0 }
  0x34   : > { %2192 = vmatmul.mubr.msk.f32.gmra.mrb[10].mxu0 %vm247_vm1, %v202_v8 }
  0x35   : > { %497 = vmatprep.mubr.f32.mxu0 %v3361_v0 }
  0x38   : > { %2193 = vmatmul.mubr.msk.f32.gmra.mrb[12].mxu0 %vm247_vm1, %v203_v9 }
  0x39   : > { %503 = vmatprep.mubr.f32.mxu0 %v3361_v0 }
  0x3c   : > { %2194 = vmatmul.mubr.msk.f32.gmra.mrb[14].mxu0 %vm247_vm1, %v204_v10 }
  0x3d   : > { %509 = vmatprep.mubr.f32.mxu0 %v3361_v0 }
  0x40   : > { %2195 = vmatmul.mubr.msk.f32.gmra.mrb[16].mxu0 %vm247_vm1, %v205_v11 }
  0x41   : > { %515 = vmatprep.mubr.f32.mxu0 %v3361_v0 }
  0x44   : > { %2196 = vmatmul.mubr.msk.f32.gmra.mrb[18].mxu0 %vm247_vm1, %v206_v12 }
  0x45   : > { %521 = vmatprep.mubr.f32.mxu0 %v3361_v0 }
  0x48   : > { %2197 = vmatmul.mubr.msk.f32.gmra.mrb[20].mxu0 %vm247_vm1, %v207_v13 }
  0x49   : > { %527 = vmatprep.mubr.f32.mxu0 %v3361_v0 }
  0x4c   : > { %2198 = vmatmul.mubr.msk.f32.gmra.mrb[22].mxu0 %vm247_vm1, %v208_v14 }
  0x4d   : > { %533 = vmatprep.mubr.f32.mxu0 %v3361_v0 }
  0x50   : > { %2199 = vmatmul.mubr.msk.f32.gmra.mrb[24].mxu0 %vm247_vm1, %v209_v15 }
  0x51   : > { %539 = vmatprep.mubr.f32.mxu0 %v3361_v0 }
  0x54   : > { %2200 = vmatmul.mubr.msk.f32.gmra.mrb[26].mxu0 %vm247_vm1, %v210_v16 }
  0x55   : > { %545 = vmatprep.mubr.f32.mxu0 %v3361_v0 }
  0x58   : > { %2201 = vmatmul.mubr.msk.f32.gmra.mrb[28].mxu0 %vm247_vm1, %v211_v17 }
  0x59   : > { %551 = vmatprep.mubr.f32.mxu0 %v3361_v0 }
  0x5c   : > { %2202 = vmatmul.mubr.msk.f32.gmra.mrb[30].mxu0 %vm247_vm1, %v212_v18 }
  0x5d   : > { %557 = vmatprep.mubr.f32.mxu0 %v3361_v0 }
  0x60   : > { %2203 = vmatmul.mubr.msk.f32.gmra.mrb[32].mxu0 %vm247_vm1, %v213_v19 }
  0x61   : > { %563 = vmatprep.mubr.f32.mxu0 %v3361_v0 }
  0x64   : > { %2204 = vmatmul.mubr.msk.f32.gmra.mrb[34].mxu0 %vm247_vm1, %v214_v20 }
  0x65   : > { %569 = vmatprep.mubr.f32.mxu0 %v3361_v0 }
  0x68   : > { %2205 = vmatmul.mubr.msk.f32.gmra.mrb[36].mxu0 %vm247_vm1, %v215_v21 }
  0x69   : > { %575 = vmatprep.mubr.f32.mxu0 %v3361_v0 }
  0x6c   : > { %2206 = vmatmul.mubr.msk.f32.gmra.mrb[38].mxu0 %vm247_vm1, %v216_v22 }
  0x6d   : > { %581 = vmatprep.mubr.f32.mxu0 %v3361_v0 }
  0x70   : > { %2207 = vmatmul.mubr.msk.f32.gmra.mrb[40].mxu0 %vm247_vm1, %v217_v23 }
  0x71   : > { %587 = vmatprep.mubr.f32.mxu0 %v3361_v0 }
  0x74   : > { %2208 = vmatmul.mubr.msk.f32.gmra.mrb[42].mxu0 %vm247_vm1, %v218_v24 }
  0x75   : > { %593 = vmatprep.mubr.f32.mxu0 %v3361_v0 }
  0x78   : > { %2209 = vmatmul.mubr.msk.f32.gmra.mrb[44].mxu0 %vm247_vm1, %v219_v25 }
  0x79   : > { %599 = vmatprep.mubr.f32.mxu0 %v3361_v0 }
  0x7c   : > { %2210 = vmatmul.mubr.msk.f32.gmra.mrb[46].mxu0 %vm247_vm1, %v220_v26 }
  0x7d   : > { %605 = vmatprep.mubr.f32.mxu0 %v3361_v0 }
  0x80   : > { %2211 = vmatmul.mubr.msk.f32.gmra.mrb[48].mxu0 %vm247_vm1, %v221_v27 }
  0x81   : > { %611 = vmatprep.mubr.f32.mxu0 %v3361_v0 }
  0x84   : > { %2212 = vmatmul.mubr.msk.f32.gmra.mrb[50].mxu0 %vm247_vm1, %v222_v28 }
  0x85   : > { %617 = vmatprep.mubr.f32.mxu0 %v3361_v0 }
  0x88   : > { %2213 = vmatmul.mubr.msk.f32.gmra.mrb[52].mxu0 %vm247_vm1, %v223_v29 }
  0x89   : > { %623 = vmatprep.mubr.f32.mxu0 %v3361_v0 }
  0x8c   : > { %2214 = vmatmul.mubr.msk.f32.gmra.mrb[54].mxu0 %vm247_vm1, %v224_v30 }
  0x8d   : > { %629 = vmatprep.mubr.f32.mxu0 %v3361_v0 }
  0x90   : > { %2215 = vmatmul.mubr.msk.f32.gmra.mrb[56].mxu0 %vm247_vm1, %v225_v31 }
  0x91   : > { %635 = vmatprep.mubr.f32.mxu0 %v3361_v0 }
  0x94   : > { %2216 = vmatmul.mubr.msk.f32.gmra.mrb[58].mxu0 %vm247_vm1, %v226_v32 }
  0x95   : > { %641 = vmatprep.mubr.f32.mxu0 %v3361_v0 }
  0x98   : > { %2217 = vmatmul.mubr.msk.f32.gmra.mrb[60].mxu0 %vm247_vm1, %v227_v33 }
  0x99   : > { %647 = vmatprep.mubr.f32.mxu0 %v3361_v0 }
  0x9c   : > { %2218 = vmatmul.mubr.msk.f32.gmra.mrb[62].mxu0 %vm247_vm1, %v228_v34 }
  0x9d   : > { %653 = vmatprep.mubr.f32.mxu0 %v3361_v0 }
  0xa0   : > { %2219 = vmatmul.mubr.msk.f32.gmra.mrb[64].mxu0 %vm247_vm1, %v229_v35 }
  0xa1   : > { %659 = vmatprep.mubr.f32.mxu0 %v3361_v0 }
  0xa4   : > { %2220 = vmatmul.mubr.msk.f32.gmra.mrb[66].mxu0 %vm247_vm1, %v230_v36 }
  0xa5   : > { %665 = vmatprep.mubr.f32.mxu0 %v3361_v0 }
  0xa8   : > { %2221 = vmatmul.mubr.msk.f32.gmra.mrb[68].mxu0 %vm247_vm1, %v231_v37 }
  0xa9   : > { %671 = vmatprep.mubr.f32.mxu0 %v3361_v0 }
  0xac   : > { %2222 = vmatmul.mubr.msk.f32.gmra.mrb[70].mxu0 %vm247_vm1, %v232_v38 }
  0xad   : > { %677 = vmatprep.mubr.f32.mxu0 %v3361_v0  ;;  %v3368_v0 = vmov 1.0  }
  0xae   : > { %850 = vmatprep.mubr.f32.mxu1 %v3368_v0 }
  0xf3   : > { %v2829_v39 = vpop.f32.mrb[0].mxu0 }
  0xf4   : > { %v2831_v40 = vpop.f32.mrb[1].mxu0 }
  0xf7   : > { %v2833_v41 = vpop.f32.mrb[2].mxu0 }
  0xf8   : > { %v2837_v43 = vpop.f32.mrb[3].mxu0 }
  0xfb   : > { %v2841_v45 = vpop.f32.mrb[4].mxu0 }
  0xfc   : > { %v2843_v46 = vpop.f32.mrb[5].mxu0 }
  0xff   : > { %v2845_v47 = vpop.f32.mrb[6].mxu0 }
 0x100   : > { %v2849_v49 = vpop.f32.mrb[7].mxu0 }
 0x103   : > { %v2853_v51 = vpop.f32.mrb[8].mxu0 }
 0x104   : > { %3389 = vst [vmem:[#allocation6_spill] sm:$0xff] %v2853_v51  ;;  %v2855_v52 = vpop.f32.mrb[9].mxu0 }
 0x107   : > { %v2857_v53 = vpop.f32.mrb[10].mxu0 }
 0x108   : > { %3390 = vst [vmem:[#allocation7_spill] sm:$0xff] %v2857_v53  ;;  %v2861_v55 = vpop.f32.mrb[11].mxu0 }
 0x10b   : > { %v2865_v57 = vpop.f32.mrb[12].mxu0 }
 0x10c   : > { %3391 = vst [vmem:[#allocation8_spill] sm:$0xff] %v2865_v57  ;;  %v2867_v58 = vpop.f32.mrb[13].mxu0 }
 0x10d   : > { %3392 = vst [vmem:[#allocation9_spill] sm:$0xff] %v2867_v58 }
 0x10f   : > { %v2869_v59 = vpop.f32.mrb[14].mxu0 }
 0x110   : > { %3393 = vst [vmem:[#allocation10_spill] sm:$0xff] %v2869_v59  ;;  %v2873_v61 = vpop.f32.mrb[15].mxu0 }
 0x111   : > { %3394 = vst [vmem:[#allocation11_spill] sm:$0xff] %v2873_v61 }
 0x113   : > { %v2877_v63 = vpop.f32.mrb[16].mxu0 }
 0x114   : > { %3395 = vst [vmem:[#allocation12_spill] sm:$0xff] %v2877_v63  ;;  %v2879_v1 = vpop.f32.mrb[17].mxu0 }
 0x115   : > { %3396 = vst [vmem:[#allocation13_spill] sm:$0xff] %v2879_v1 }
 0x117   : > { %v2881_v2 = vpop.f32.mrb[18].mxu0 }
 0x118   : > { %3397 = vst [vmem:[#allocation14_spill] sm:$0xff] %v2881_v2  ;;  %v2885_v4 = vpop.f32.mrb[19].mxu0 }
 0x119   : > { %3398 = vst [vmem:[#allocation15_spill] sm:$0xff] %v2885_v4 }
 0x11b   : > { %v2889_v6 = vpop.f32.mrb[20].mxu0 }
 0x11c   : > { %3399 = vst [vmem:[#allocation16_spill] sm:$0xff] %v2889_v6  ;;  %v2891_v7 = vpop.f32.mrb[21].mxu0 }
 0x11d   : > { %3400 = vst [vmem:[#allocation17_spill] sm:$0xff] %v2891_v7  ;;  %v234_v7 = vld [vmem:[%s3357_s1 + $0x128] sm:$0xff] }
 0x11f   : > { %v2893_v8 = vpop.f32.mrb[22].mxu0 }
 0x120   : > { %3401 = vst [vmem:[#allocation18_spill] sm:$0xff] %v2893_v8  ;;  %v2897_v10 = vpop.f32.mrb[23].mxu0  ;;  %v3411_v8 = vmov 0.0  }
 0x121   : > { %3402 = vst [vmem:[#allocation19_spill] sm:$0xff] %v2897_v10  ;;  %v235_v10 = vld [vmem:[%s3357_s1 + $0x130] sm:$0xff] }
 0x123   : > { %v2901_v12 = vpop.f32.mrb[24].mxu0 }
 0x124   : > { %3403 = vst [vmem:[#allocation20_spill] sm:$0xff] %v2901_v12  ;;  %v2903_v13 = vpop.f32.mrb[25].mxu0 }
 0x125   : > { %3404 = vst [vmem:[#allocation21_spill] sm:$0xff] %v2903_v13 }
 0x127   : > { %v2905_v14 = vpop.f32.mrb[26].mxu0 }
 0x128   : > { %3405 = vst [vmem:[#allocation22_spill] sm:$0xff] %v2905_v14  ;;  %v2909_v16 = vpop.f32.mrb[27].mxu0 }
 0x129   : > { %3406 = vst [vmem:[#allocation23_spill] sm:$0xff] %v2909_v16 }
 0x12b   : > { %v2913_v18 = vpop.f32.mrb[28].mxu0 }
 0x12c   : > { %3407 = vst [vmem:[#allocation24_spill] sm:$0xff] %v2913_v18  ;;  %v2915_v19 = vpop.f32.mrb[29].mxu0 }
 0x12d   : > { %3408 = vst [vmem:[#allocation25_spill] sm:$0xff] %v2915_v19 }
 0x12f   : > { %v2917_v20 = vpop.f32.mrb[30].mxu0 }
 0x130   : > { %3409 = vst [vmem:[#allocation26_spill] sm:$0xff] %v2917_v20  ;;  %v2921_v22 = vpop.f32.mrb[31].mxu0 }
 0x131   : > { %3410 = vst [vmem:[#allocation27_spill] sm:$0xff] %v2921_v22 }
 0x133   : > { %v2925_v24 = vpop.f32.mrb[32].mxu0 }
 0x134   : > { %v2927_v25 = vpop.f32.mrb[33].mxu0 }
 0x135   : > { %v750_v26 = vmax.f32 %v2925_v24, %v2927_v25 }
 0x137   : > { %751 = vmax.xlane.f32.xlu0 %v750_v26  ;;  %v2931_v27 = vpop.f32.mrb[34].mxu0 }
 0x138   : > { %v2933_v28 = vpop.f32.mrb[35].mxu0 }
 0x139   : > { %v753_v29 = vmax.f32 %v2931_v27, %v2933_v28 }
 0x13b   : > { %754 = vmax.xlane.f32.xlu0 %v753_v29  ;;  %v2937_v30 = vpop.f32.mrb[36].mxu0 }
 0x13c   : > { %v2939_v31 = vpop.f32.mrb[37].mxu0 }
 0x13d   : > { %v756_v32 = vmax.f32 %v2937_v30, %v2939_v31 }
 0x13f   : > { %757 = vmax.xlane.f32.xlu1 %v756_v32  ;;  %v2943_v33 = vpop.f32.mrb[38].mxu0 }
 0x140   : > { %v2945_v34 = vpop.f32.mrb[39].mxu0 }
 0x141   : > { %v759_v35 = vmax.f32 %v2943_v33, %v2945_v34 }
 0x143   : > { %760 = vmax.xlane.f32.xlu1 %v759_v35  ;;  %v2949_v36 = vpop.f32.mrb[40].mxu0 }
 0x144   : > { %v2951_v37 = vpop.f32.mrb[41].mxu0 }
 0x145   : > { %v1060_v38 = vmax.f32 %v2949_v36, %v2951_v37 }
 0x147   : > { %1061 = vmax.xlane.f32.xlu0 %v1060_v38  ;;  %v2955_v26 = vpop.f32.mrb[42].mxu0 }
 0x148   : > { %v2957_v29 = vpop.f32.mrb[43].mxu0 }
 0x149   : > { %v1063_v32 = vmax.f32 %v2955_v26, %v2957_v29 }
 0x14b   : > { %1064 = vmax.xlane.f32.xlu1 %v1063_v32  ;;  %v2961_v21 = vpop.f32.mrb[44].mxu0 }
 0x14c   : > { %v2963_v23 = vpop.f32.mrb[45].mxu0 }
 0x14d   : > { %v1066_v35 = vmax.f32 %v2961_v21, %v2963_v23 }
 0x14f   : > { %1067 = vmax.xlane.f32.xlu0 %v1066_v35  ;;  %v2967_v15 = vpop.f32.mrb[46].mxu0 }
 0x150   : > { %v2969_v17 = vpop.f32.mrb[47].mxu0 }
 0x151   : > { %v1069_v38 = vmax.f32 %v2967_v15, %v2969_v17 }
 0x153   : > { %1070 = vmax.xlane.f32.xlu1 %v1069_v38  ;;  %v2973_v9 = vpop.f32.mrb[48].mxu0 }
 0x154   : > { %v2975_v11 = vpop.f32.mrb[49].mxu0 }
 0x155   : > { %v1369_v32 = vmax.f32 %v2973_v9, %v2975_v11 }
 0x157   : > { %1370 = vmax.xlane.f32.xlu0 %v1369_v32  ;;  %v2979_v3 = vpop.f32.mrb[50].mxu0 }
 0x158   : > { %v2981_v5 = vpop.f32.mrb[51].mxu0 }
 0x159   : > { %v1372_v35 = vmax.f32 %v2979_v3, %v2981_v5 }
 0x15b   : > { %1373 = vmax.xlane.f32.xlu1 %v1372_v35  ;;  %v2985_v60 = vpop.f32.mrb[52].mxu0 }
 0x15c   : > { %v2987_v62 = vpop.f32.mrb[53].mxu0 }
 0x15d   : > { %v1375_v38 = vmax.f32 %v2985_v60, %v2987_v62 }
 0x15f   : > { %1376 = vmax.xlane.f32.xlu0 %v1375_v38  ;;  %v2991_v54 = vpop.f32.mrb[54].mxu0 }
 0x160   : > { %v2993_v56 = vpop.f32.mrb[55].mxu0 }
 0x161   : > { %v1378_v32 = vmax.f32 %v2991_v54, %v2993_v56 }
 0x163   : > { %1379 = vmax.xlane.f32.xlu1 %v1378_v32  ;;  %v2997_v48 = vpop.f32.mrb[56].mxu0 }
 0x164   : > { %v2999_v50 = vpop.f32.mrb[57].mxu0 }
 0x165   : > { %v1678_v35 = vmax.f32 %v2997_v48, %v2999_v50 }
 0x167   : > { %1679 = vmax.xlane.f32.xlu0 %v1678_v35  ;;  %v3003_v42 = vpop.f32.mrb[58].mxu0 }
 0x168   : > { %v3005_v44 = vpop.f32.mrb[59].mxu0 }
 0x169   : > { %v1681_v38 = vmax.f32 %v3003_v42, %v3005_v44 }
 0x16b   : > { %1682 = vmax.xlane.f32.xlu1 %v1681_v38  ;;  %v3010_v32 = vpop.f32.mrb[60].mxu0 }
 0x16c   : > { %v3012_v18 = vpop.f32.mrb[61].mxu0 }
 0x16d   : > { %v1684_v20 = vmax.f32 %v3010_v32, %v3012_v18 }
 0x16f   : > { %1685 = vmax.xlane.f32.xlu0 %v1684_v20  ;;  %v3016_v35 = vpop.f32.mrb[62].mxu0 }
 0x170   : > { %v3018_v19 = vpop.f32.mrb[63].mxu0 }
 0x171   : > { %v1687_v22 = vmax.f32 %v3016_v35, %v3018_v19 }
 0x173   : > { %1688 = vmax.xlane.f32.xlu1 %v1687_v22  ;;  %v3022_v12 = vpop.f32.mrb[64].mxu0  ;;  %v233_v22 = vld [vmem:[%s3357_s1 + $0x120] sm:$0xff] }
 0x174   : > { %v3024_v0 = vpop.f32.mrb[65].mxu0  ;;  %2223 = vmatmul.mubr.msk.f32.gmra.mrb[72].mxu0 %vm247_vm1, %v233_v22  ;;  %v236_v22 = vld [vmem:[%s3357_s1 + $0x138] sm:$0xff] }
 0x175   : > { %683 = vmatprep.mubr.f32.mxu0 %v3411_v8 }
 0x177   : > { %v3026_v38 = vpop.f32.mrb[66].mxu0 }
 0x178   : > { %v3028_v14 = vpop.f32.mrb[67].mxu0  ;;  %2224 = vmatmul.mubr.msk.f32.gmra.mrb[74].mxu0 %vm247_vm1, %v234_v7 }
 0x179   : > { %689 = vmatprep.mubr.f32.mxu0 %v3411_v8 }
 0x17b   : > { %v3030_v13 = vpop.f32.mrb[68].mxu0 }
 0x17c   : > { %v3032_v16 = vpop.f32.mrb[69].mxu0  ;;  %2225 = vmatmul.mubr.msk.f32.gmra.mrb[76].mxu0 %vm247_vm1, %v235_v10 }
 0x17d   : > { %695 = vmatprep.mubr.f32.mxu0 %v3411_v8 }
 0x17f   : > { %v3034_v20 = vpop.f32.mrb[70].mxu0 }
 0x180   : > { %v3036_v6 = vpop.f32.mrb[71].mxu0  ;;  %2226 = vmatmul.mubr.msk.f32.gmra.mrb[78].mxu0 %vm247_vm1, %v236_v22 }
 0x181   : > { %701 = vmatprep.mubr.f32.mxu0 %v3411_v8 }
 0x1c4   : > { %v752_v63 = vpop.xlane.xlu0 %751 }
 0x1c5   : > { %v762_v7 = vsub.f32 %v2925_v24, %v752_v63  ;;  %v763_v2 = vsub.f32 %v2927_v25, %v752_v63 }
 0x1c7   : > { %v770_v1 = vmul.f32 1.442695, %v762_v7  ;;  %v772_v4 = vmul.f32 1.442695, %v763_v2 }
 0x1c8   : > { %v755_v57 = vpop.xlane.xlu0 %754 }
 0x1c9   : > { %v764_v10 = vsub.f32 %v2931_v27, %v755_v57  ;;  %v765_v59 = vsub.f32 %v2933_v28, %v755_v57  ;;  %2430 = vpow2.f32 %v770_v1 }
 0x1ca   : > { %2432 = vpow2.f32 %v772_v4 }
 0x1cb   : > { %v774_v58 = vmul.f32 1.442695, %v764_v10  ;;  %v776_v61 = vmul.f32 1.442695, %v765_v59 }
 0x1cc   : > { %v758_v51 = vpop.xlane.xlu1 %757 }
 0x1cd   : > { %2434 = vpow2.f32 %v774_v58  ;;  %v766_v22 = vsub.f32 %v2937_v30, %v758_v51  ;;  %v767_v53 = vsub.f32 %v2939_v31, %v758_v51 }
 0x1ce   : > { %2436 = vpow2.f32 %v776_v61 }
 0x1cf   : > { %v778_v24 = vmul.f32 1.442695, %v766_v22  ;;  %v780_v63 = vmul.f32 1.442695, %v767_v53 }
 0x1d0   : > { %v761_v25 = vpop.xlane.xlu1 %760 }
 0x1d1   : > { %v768_v2 = vsub.f32 %v2943_v33, %v761_v25  ;;  %v769_v27 = vsub.f32 %v2945_v34, %v761_v25  ;;  %2438 = vpow2.f32 %v778_v24 }
 0x1d2   : > { %2440 = vpow2.f32 %v780_v63 }
 0x1d3   : > { %v782_v57 = vmul.f32 1.442695, %v768_v2  ;;  %v784_v1 = vmul.f32 1.442695, %v769_v27  ;;  %v2431_v4 = vpop.eup %2430 }
 0x1d4   : > { %v1062_v59 = vpop.xlane.xlu0 %1061  ;;  %v2433_v51 = vpop.eup %2432 }
 0x1d5   : > { %2442 = vpow2.f32 %v782_v57  ;;  %v1072_v58 = vsub.f32 %v2949_v36, %v1062_v59  ;;  %v1073_v28 = vsub.f32 %v2951_v37, %v1062_v59 }
 0x1d6   : > { %2444 = vpow2.f32 %v784_v1 }
 0x1d7   : > { %v2435_v61 = vpop.eup %2434  ;;  %v1080_v53 = vmul.f32 1.442695, %v1072_v58  ;;  %v1082_v31 = vmul.f32 1.442695, %v1073_v28 }
 0x1d8   : > { %v2437_v30 = vpop.eup %2436  ;;  %v1065_v33 = vpop.xlane.xlu1 %1064  ;;  %v2260_v7 = vpack.c.bf16 %v2435_v61, %v2431_v4 }
 0x1d9   : > { %v1074_v34 = vsub.f32 %v2955_v26, %v1065_v33  ;;  %v1075_v10 = vsub.f32 %v2957_v29, %v1065_v33  ;;  %v2258_v22 = vpack.c.bf16 %v2437_v30, %v2433_v51  ;;  %2446 = vpow2.f32 %v1080_v53 }
 0x1da   : > { %2448 = vpow2.f32 %v1082_v31 }
 0x1db   : > { %v1084_v24 = vmul.f32 1.442695, %v1074_v34  ;;  %v1086_v63 = vmul.f32 1.442695, %v1075_v10  ;;  %2259 = vmatprep.subr.bf16.mxu1 %v2258_v22  ;;  %v2439_v37 = vpop.eup %2438 }
 0x1dc   : > { %2261 = vmatpush1.bf16.xpose.msra.mxu1 %v2260_v7  ;;  %v1068_v36 = vpop.xlane.xlu0 %1067  ;;  %v2441_v27 = vpop.eup %2440 }
 0x1dd   : > { %2450 = vpow2.f32 %v1084_v24  ;;  %v1076_v25 = vsub.f32 %v2961_v21, %v1068_v36  ;;  %v1077_v2 = vsub.f32 %v2963_v23, %v1068_v36 }
 0x1de   : > { %2452 = vpow2.f32 %v1086_v63 }
 0x1df   : > { %v2443_v57 = vpop.eup %2442  ;;  %v1088_v26 = vmul.f32 1.442695, %v1076_v25  ;;  %v1090_v29 = vmul.f32 1.442695, %v1077_v2  ;;  %v3412_v2 = vmov 1.0  }
 0x1e0   : > { %v2445_v1 = vpop.eup %2444  ;;  %v1071_v59 = vpop.xlane.xlu1 %1070  ;;  %v2264_v4 = vpack.c.bf16 %v2443_v57, %v2439_v37 }
 0x1e1   : > { %v1078_v58 = vsub.f32 %v2967_v15, %v1071_v59  ;;  %v1079_v28 = vsub.f32 %v2969_v17, %v1071_v59  ;;  %v2262_v51 = vpack.c.bf16 %v2445_v1, %v2441_v27  ;;  %2454 = vpow2.f32 %v1088_v26 }
 0x1e2   : > { %2456 = vpow2.f32 %v1090_v29 }
 0x1e3   : > { %v1092_v61 = vmul.f32 1.442695, %v1078_v58  ;;  %v1094_v53 = vmul.f32 1.442695, %v1079_v28  ;;  %2263 = vmatprep.subr.bf16.mxu1 %v2262_v51  ;;  %v2447_v23 = vpop.eup %2446 }
 0x1e4   : > { %2265 = vmatpush1.bf16.xpose.msra.mxu1 %v2264_v4  ;;  %v1371_v21 = vpop.xlane.xlu0 %1370  ;;  %v2449_v33 = vpop.eup %2448 }
 0x1e5   : > { %2458 = vpow2.f32 %v1092_v61  ;;  %2267 = vmatprep.subr.bf16.mxu1 %v2258_v22  ;;  %v1381_v30 = vsub.f32 %v2973_v9, %v1371_v21  ;;  %v1382_v31 = vsub.f32 %v2975_v11, %v1371_v21  ;;  %v3413_v21 = vpack.c.bf16 %v2837_v43, %v2831_v40 }
 0x1e6   : > { %2460 = vpow2.f32 %v1094_v53 }
 0x1e7   : > { %v2451_v15 = vpop.eup %2450  ;;  %v1389_v34 = vmul.f32 1.442695, %v1381_v30  ;;  %v1391_v10 = vmul.f32 1.442695, %v1382_v31 }
 0x1e8   : > { %v2453_v17 = vpop.eup %2452  ;;  %v1374_v24 = vpop.xlane.xlu1 %1373  ;;  %v3076_v63 = vpack.c.bf16 %v2451_v15, %v2447_v23 }
 0x1e9   : > { %v1383_v36 = vsub.f32 %v2979_v3, %v1374_v24  ;;  %v1384_v37 = vsub.f32 %v2981_v5, %v1374_v24  ;;  %v3080_v25 = vpack.c.bf16 %v2453_v17, %v2449_v33  ;;  %2462 = vpow2.f32 %v1389_v34 }
 0x1ea   : > { %2464 = vpow2.f32 %v1391_v10 }
 0x1eb   : > { %v1393_v22 = vmul.f32 1.442695, %v1383_v36  ;;  %v1395_v9 = vmul.f32 1.442695, %v1384_v37  ;;  %851 = vmatmul.mubr.f32.vlgmr.msra.gmra.mrb[0].mxu1 %v3412_v2  ;;  %v2455_v27 = vpop.eup %2454  ;;  %v3415_v37 = vpack.c.bf16 %v2849_v49, %v2843_v46 }
 0x1ec   : > { %2269 = vmatpush1.bf16.xpose.msra.mxu1 %v2260_v7  ;;  %v1377_v11 = vpop.xlane.xlu0 %1376  ;;  %921 = vmatprep.mubr.f32.mxu1 %v3024_v0  ;;  %v2457_v5 = vpop.eup %2456 }
 0x1ed   : > { %2466 = vpow2.f32 %v1393_v22  ;;  %2271 = vmatprep.subr.bf16.mxu1 %v2262_v51  ;;  %v1385_v57 = vsub.f32 %v2985_v60, %v1377_v11  ;;  %v1386_v3 = vsub.f32 %v2987_v62, %v1377_v11 }
 0x1ee   : > { %2468 = vpow2.f32 %v1395_v9 }
 0x1ef   : > { %v2459_v26 = vpop.eup %2458  ;;  %v1397_v1 = vmul.f32 1.442695, %v1385_v57  ;;  %v1399_v59 = vmul.f32 1.442695, %v1386_v3 }
 0x1f0   : > { %v2461_v29 = vpop.eup %2460  ;;  %v1380_v58 = vpop.xlane.xlu1 %1379  ;;  %v3086_v28 = vpack.c.bf16 %v2459_v26, %v2455_v27 }
 0x1f1   : > { %v1387_v7 = vsub.f32 %v2991_v54, %v1380_v58  ;;  %v1388_v0 = vsub.f32 %v2993_v56, %v1380_v58  ;;  %v3090_v61 = vpack.c.bf16 %v2461_v29, %v2457_v5  ;;  %2470 = vpow2.f32 %v1397_v1 }
 0x1f2   : > { %2472 = vpow2.f32 %v1399_v59 }
 0x1f3   : > { %v1401_v51 = vmul.f32 1.442695, %v1387_v7  ;;  %v1403_v60 = vmul.f32 1.442695, %v1388_v0  ;;  %v2463_v53 = vpop.eup %2462 }
 0x1f4   : > { %2273 = vmatpush1.bf16.xpose.msra.mxu1 %v2264_v4  ;;  %v1680_v62 = vpop.xlane.xlu0 %1679  ;;  %v2465_v30 = vpop.eup %2464 }
 0x1f5   : > { %2474 = vpow2.f32 %v1401_v51  ;;  %2275 = vmatprep.subr.bf16.mxu1 %v3413_v21  ;;  %v1690_v23 = vsub.f32 %v2997_v48, %v1680_v62  ;;  %v1691_v54 = vsub.f32 %v2999_v50, %v1680_v62  ;;  %v3414_v48 = vpack.c.bf16 %v2833_v41, %v2829_v39  ;;  %v237_v62 = vld [vmem:[%s3357_s1 + $0x140] sm:$0xff]  ;;  %v239_v21 = vld [vmem:[%s3357_s1 + $0x150] sm:$0xff] }
 0x1f6   : > { %2476 = vpow2.f32 %v1403_v60  ;;  %2227 = vmatmul.mubr.msk.f32.gmra.mrb[80].mxu0 %vm247_vm1, %v237_v62 }
 0x1f7   : > { %v2467_v56 = vpop.eup %2466  ;;  %v1698_v31 = vmul.f32 1.442695, %v1690_v23  ;;  %v1700_v15 = vmul.f32 1.442695, %v1691_v54  ;;  %707 = vmatprep.mubr.f32.mxu0 %v3411_v8  ;;  %v240_v23 = vld [vmem:[%s3357_s1 + $0x158] sm:$0xff] }
 0x1f8   : > { %v2469_v33 = vpop.eup %2468  ;;  %v1683_v34 = vpop.xlane.xlu1 %1682  ;;  %v3097_v17 = vpack.c.bf16 %v2467_v56, %v2463_v53  ;;  %v238_v53 = vld [vmem:[%s3357_s1 + $0x148] sm:$0xff]  ;;  %v942_v56 = vlaneseq }
 0x1f9   : > { %v1692_v4 = vsub.f32 %v3003_v42, %v1683_v34  ;;  %v1693_v10 = vsub.f32 %v3005_v44, %v1683_v34  ;;  %v3101_v24 = vpack.c.bf16 %v2469_v33, %v2465_v30  ;;  %2478 = vpow2.f32 %v1698_v31 }
 0x1fa   : > { %2480 = vpow2.f32 %v1700_v15  ;;  %2228 = vmatmul.mubr.msk.f32.gmra.mrb[82].mxu0 %vm247_vm1, %v238_v53  ;;  %v943_v31 = vshrl.u32 %v942_v56, 7 }
 0x1fb   : > { %v1702_v40 = vmul.f32 1.442695, %v1692_v4  ;;  %v1704_v43 = vmul.f32 1.442695, %v1693_v10  ;;  %922 = vmatmul.mubr.f32.vlgmr.msra.gmra.mrb[2].mxu1 %v3022_v12  ;;  %v2471_v36 = vpop.eup %2470  ;;  %713 = vmatprep.mubr.f32.mxu0 %v3411_v8 }
 0x1fc   : > { %2277 = vmatpush1.bf16.msra.mxu1 %v3414_v48  ;;  %v1686_v50 = vpop.xlane.xlu0 %1685  ;;  %926 = vmatprep.mubr.f32.mxu1 %v3028_v14  ;;  %v2473_v22 = vpop.eup %2472  ;;  %v3416_v14 = vpack.c.bf16 %v2845_v47, %v2841_v45  ;;  %v3157_v33 = vsub.s32 0, %v943_v31 }
 0x1fd   : > { %2482 = vpow2.f32 %v1702_v40  ;;  %v1694_v42 = vsub.f32 %v3010_v32, %v1686_v50  ;;  %v1695_v44 = vsub.f32 %v3012_v18, %v1686_v50  ;;  %2279 = vmatprep.subr.bf16.mxu1 %v3415_v37 }
 0x1fe   : > { %2484 = vpow2.f32 %v1704_v43  ;;  %2229 = vmatmul.mubr.msk.f32.gmra.mrb[84].mxu0 %vm247_vm1, %v239_v21 }
 0x1ff   : > { %v2475_v12 = vpop.eup %2474  ;;  %v1706_v9 = vmul.f32 1.442695, %v1694_v42  ;;  %927 = vmatmul.mubr.f32.gmra.mrb[4].mxu1 %v3026_v38  ;;  %v1708_v41 = vmul.f32 1.442695, %v1695_v44  ;;  %719 = vmatprep.mubr.f32.mxu0 %v3411_v8 }
 0x200   : > { %v2477_v39 = vpop.eup %2476  ;;  %2281 = vmatpush1.bf16.msra.mxu1 %v3416_v14  ;;  %v1689_v11 = vpop.xlane.xlu1 %1688  ;;  %931 = vmatprep.mubr.f32.mxu1 %v3032_v16  ;;  %v3118_v18 = vpack.c.bf16 %v2475_v12, %v2471_v36  ;;  %v3421_v14 = vld [vmem:[#allocation11_spill] sm:$0xff] }
 0x201   : > { %v1696_v46 = vsub.f32 %v3016_v35, %v1689_v11  ;;  %v1697_v49 = vsub.f32 %v3018_v19, %v1689_v11  ;;  %2283 = vmatprep.subr.bf16.mxu1 %v3080_v25  ;;  %v3123_v32 = vpack.c.bf16 %v2477_v39, %v2473_v22  ;;  %2486 = vpow2.f32 %v1706_v9  ;;  %v3419_v39 = vld [vmem:[#allocation6_spill] sm:$0xff]  ;;  %v3422_v11 = vld [vmem:[#allocation9_spill] sm:$0xff] }
 0x202   : > { %2488 = vpow2.f32 %v1708_v41  ;;  %2230 = vmatmul.mubr.msk.f32.gmra.mrb[86].mxu0 %vm247_vm1, %v240_v23  ;;  %v3417_v9 = vpack.c.bf16 %v2861_v55, %v2855_v52 }
 0x203   : > { %v1710_v38 = vmul.f32 1.442695, %v1696_v46  ;;  %v1712_v27 = vmul.f32 1.442695, %v1697_v49  ;;  %932 = vmatmul.mubr.f32.gmra.mrb[6].mxu1 %v3030_v13  ;;  %v2479_v45 = vpop.eup %2478  ;;  %725 = vmatprep.mubr.f32.mxu0 %v3411_v8  ;;  %v3423_v46 = vpack.c.bf16 %v3421_v14, %v3422_v11  ;;  %v3425_v49 = vld [vmem:[#allocation8_spill] sm:$0xff] }
 0x204   : > { %936 = vmatprep.mubr.f32.mxu1 %v3036_v6  ;;  %v2481_v47 = vpop.eup %2480 }
 0x205   : > { %2490 = vpow2.f32 %v1710_v38 }
 0x206   : > { %2492 = vpow2.f32 %v1712_v27 }
 0x207   : > { %v2483_v16 = vpop.eup %2482  ;;  %937 = vmatmul.mubr.f32.gmra.mrb[8].mxu1 %v3034_v20 }
 0x208   : > { %v2485_v19 = vpop.eup %2484  ;;  %1027 = vmatprep.mubr.f32.mxu1 %v3411_v8  ;;  %v3129_v35 = vpack.c.bf16 %v2483_v16, %v2479_v45 }
 0x209   : > { %v3131_v57 = vpack.c.bf16 %v2485_v19, %v2481_v47  ;;  %v241_v19 = vld [vmem:[%s3357_s1 + $0x160] sm:$0xff] }
 0x20a   : > { %2231 = vmatmul.mubr.msk.f32.gmra.mrb[88].mxu0 %vm247_vm1, %v241_v19 }
 0x20b   : > { %v2487_v3 = vpop.eup %2486  ;;  %731 = vmatprep.mubr.f32.mxu0 %v3411_v8 }
 0x20c   : > { %v2489_v5 = vpop.eup %2488 }
 0x20f   : > { %v2491_v13 = vpop.eup %2490 }
 0x210   : > { %v2493_v26 = vpop.eup %2492  ;;  %v3133_v1 = vpack.c.bf16 %v2491_v13, %v2487_v3  ;;  %v242_v3 = vld [vmem:[%s3357_s1 + $0x168] sm:$0xff]  ;;  %v244_v13 = vld [vmem:[%s3357_s1 + $0x178] sm:$0xff] }
 0x211   : > { %v3135_v6 = vpack.c.bf16 %v2493_v26, %v2489_v5  ;;  %2232 = vmatmul.mubr.msk.f32.gmra.mrb[90].mxu0 %vm247_vm1, %v242_v3  ;;  %v243_v5 = vld [vmem:[%s3357_s1 + $0x170] sm:$0xff] }
 0x212   : > { %737 = vmatprep.mubr.f32.mxu0 %v3411_v8 }
 0x215   : > { %2233 = vmatmul.mubr.msk.f32.gmra.mrb[92].mxu0 %vm247_vm1, %v243_v5 }
 0x216   : > { %743 = vmatprep.mubr.f32.mxu0 %v3411_v8 }
 0x219   : > { %2234 = vmatmul.mubr.msk.f32.gmra.mrb[94].mxu0 %vm247_vm1, %v244_v13 }
 0x21a   : > { %2084 = vmatprep.mubr.f32.mxu0 %v3411_v8 }
 0x247   : > { %v679_v29 = vpop.f32.mrb[72].mxu0 }
 0x248   : > { %v681_v59 = vpop.f32.mrb[73].mxu0 }
 0x24b   : > { %v685_v58 = vpop.f32.mrb[74].mxu0 }
 0x24c   : > { %v687_v7 = vpop.f32.mrb[75].mxu0 }
 0x24f   : > { %v691_v20 = vpop.f32.mrb[76].mxu0 }
 0x250   : > { %v693_v0 = vpop.f32.mrb[77].mxu0 }
 0x253   : > { %v697_v51 = vpop.f32.mrb[78].mxu0 }
 0x254   : > { %v699_v60 = vpop.f32.mrb[79].mxu0 }
 0x2be   : > { %v852_v54 = vpop.f32.mrb[0].mxu1 }
 0x2bf   : > { %v854_v30 = vpop.f32.mrb[1].mxu1  ;;  %2494 = vrcp.f32 %v852_v54 }
 0x2c9   : > { %v2495_v15 = vpop.eup %2494  ;;  %v3190_v52 = vpop.f32.mrb[80].mxu0 }
 0x2ca   : > { %v945_v34 = vrot.slane %v2495_v15, %v3157_v33  ;;  %v3192_v55 = vpop.f32.mrb[81].mxu0 }
 0x2ce   : > { %v923_v4 = vpop.f32.mrb[2].mxu1 }
 0x2cf   : > { %v946_v10 = vmul.f32 %v945_v34, %v923_v4  ;;  %v925_v40 = vpop.f32.mrb[3].mxu1 }
 0x2d1   : > { %2235 = vmatmul.mubr.msk.f32.vlgmr.msra.gmra.mrb[10].mxu1 %vm950_vm2, %v946_v10 }
 0x2d2   : > { %2285 = vmatpush1.bf16.xpose.msra.mxu1 %v3076_v63  ;;  %v928_v43 = vpop.f32.mrb[4].mxu1  ;;  %1033 = vmatprep.mubr.f32.mxu1 %v3411_v8 }
 0x2d3   : > { %v947_v48 = vmul.f32 %v945_v34, %v928_v43  ;;  %2287 = vmatprep.subr.bf16.mxu1 %v3090_v61  ;;  %v930_v50 = vpop.f32.mrb[5].mxu1 }
 0x2d5   : > { %2236 = vmatmul.mubr.msk.f32.gmra.mrb[12].mxu1 %vm950_vm2, %v947_v48 }
 0x2d6   : > { %v933_v36 = vpop.f32.mrb[6].mxu1  ;;  %1039 = vmatprep.mubr.f32.mxu1 %v3411_v8 }
 0x2d7   : > { %v948_v42 = vmul.f32 %v945_v34, %v933_v36  ;;  %v935_v44 = vpop.f32.mrb[7].mxu1 }
 0x2d9   : > { %2237 = vmatmul.mubr.msk.f32.gmra.mrb[14].mxu1 %vm950_vm2, %v948_v42 }
 0x2da   : > { %2289 = vmatpush1.bf16.xpose.msra.mxu1 %v3086_v28  ;;  %v938_v37 = vpop.f32.mrb[8].mxu1  ;;  %1045 = vmatprep.mubr.f32.mxu1 %v3411_v8 }
 0x2db   : > { %v949_v22 = vmul.f32 %v945_v34, %v938_v37  ;;  %2291 = vmatprep.subr.bf16.mxu1 %v3080_v25  ;;  %v940_v12 = vpop.f32.mrb[9].mxu1  ;;  %v3418_v25 = vld [vmem:[#allocation7_spill] sm:$0xff] }
 0x2dc   : > { %v3420_v41 = vpack.c.bf16 %v3418_v25, %v3419_v39  ;;  %v3427_v37 = vld [vmem:[#allocation15_spill] sm:$0xff] }
 0x2dd   : > { %2238 = vmatmul.mubr.msk.f32.gmra.mrb[16].mxu1 %vm950_vm2, %v949_v22  ;;  %v3428_v22 = vld [vmem:[#allocation13_spill] sm:$0xff]  ;;  %v3433_v39 = vld [vmem:[#allocation19_spill] sm:$0xff] }
 0x2de   : > { %1160 = vmatprep.mubr.f32.mxu1 %v3412_v2  ;;  %v3429_v12 = vpack.c.bf16 %v3427_v37, %v3428_v22 }
 0x2e1   : > { %1161 = vmatmul.mubr.f32.vlgmr.msra.gmra.mrb[18].mxu1 %v3412_v2 }
 0x2e2   : > { %2293 = vmatpush1.bf16.xpose.msra.mxu1 %v3076_v63  ;;  %1231 = vmatprep.mubr.f32.mxu1 %v681_v59  ;;  %v3424_v63 = vld [vmem:[#allocation10_spill] sm:$0xff] }
 0x2e3   : > { %2295 = vmatprep.subr.bf16.mxu1 %v3090_v61  ;;  %v3426_v61 = vpack.c.bf16 %v3424_v63, %v3425_v49 }
 0x2ea   : > { %2297 = vmatpush1.bf16.xpose.msra.mxu1 %v3086_v28  ;;  %v3194_v28 = vpop.f32.mrb[82].mxu0 }
 0x2eb   : > { %2299 = vmatprep.subr.bf16.mxu1 %v3417_v9  ;;  %v3196_v38 = vpop.f32.mrb[83].mxu0  ;;  %v3431_v9 = vld [vmem:[#allocation12_spill] sm:$0xff] }
 0x2ec   : > { %v3198_v27 = vpop.f32.mrb[84].mxu0 }
 0x2ed   : > { %v3200_v45 = vpop.f32.mrb[85].mxu0 }
 0x2ee   : > { %v3202_v47 = vpop.f32.mrb[86].mxu0 }
 0x2ef   : > { %v3204_v16 = vpop.f32.mrb[87].mxu0 }
 0x2f0   : > { %v727_v11 = vpop.f32.mrb[88].mxu0 }
 0x2f1   : > { %1232 = vmatmul.mubr.f32.vlgmr.msra.gmra.mrb[20].mxu1 %v679_v29 }
 0x2f2   : > { %2301 = vmatpush1.bf16.msra.mxu1 %v3420_v41  ;;  %1236 = vmatprep.mubr.f32.mxu1 %v687_v7 }
 0x2f3   : > { %2303 = vmatprep.subr.bf16.mxu1 %v3423_v46  ;;  %v729_v46 = vpop.f32.mrb[89].mxu0 }
 0x2f4   : > { %v733_v63 = vpop.f32.mrb[90].mxu0 }
 0x2f5   : > { %1237 = vmatmul.mubr.f32.gmra.mrb[22].mxu1 %v685_v58  ;;  %v735_v49 = vpop.f32.mrb[91].mxu0 }
 0x2f6   : > { %2305 = vmatpush1.bf16.msra.mxu1 %v3426_v61  ;;  %1241 = vmatprep.mubr.f32.mxu1 %v693_v0  ;;  %v739_v61 = vpop.f32.mrb[92].mxu0 }
 0x2f7   : > { %2307 = vmatprep.subr.bf16.mxu1 %v3101_v24 }
 0x2f9   : > { %1242 = vmatmul.mubr.f32.gmra.mrb[24].mxu1 %v691_v20 }
 0x2fa   : > { %1246 = vmatprep.mubr.f32.mxu1 %v699_v60 }
 0x2fd   : > { %1247 = vmatmul.mubr.f32.gmra.mrb[26].mxu1 %v697_v51 }
 0x2fe   : > { %1336 = vmatprep.mubr.f32.mxu1 %v3411_v8 }
 0x3a4   : > { %v1029_v26 = vpop.f32.mrb[10].mxu1 }
 0x3a5   : > { %v1031_v29 = vpop.f32.mrb[11].mxu1 }
 0x3a8   : > { %v1035_v59 = vpop.f32.mrb[12].mxu1 }
 0x3a9   : > { %v2356_v58 = vpack.c.bf16 %v1035_v59, %v1029_v26  ;;  %v1037_v7 = vpop.f32.mrb[13].mxu1 }
 0x3aa   : > { %v2354_v20 = vpack.c.bf16 %v1037_v7, %v1031_v29 }
 0x3ac   : > { %v1041_v0 = vpop.f32.mrb[14].mxu1  ;;  %2355 = vmatprep.subr.bf16.mxu0 %v2354_v20 }
 0x3ad   : > { %v1043_v51 = vpop.f32.mrb[15].mxu1  ;;  %2357 = vmatpush1.bf16.msra.mxu0 %v2356_v58 }
 0x3b0   : > { %v1047_v60 = vpop.f32.mrb[16].mxu1 }
 0x3b1   : > { %v2360_v62 = vpack.c.bf16 %v1047_v60, %v1041_v0  ;;  %v1049_v53 = vpop.f32.mrb[17].mxu1 }
 0x3b2   : > { %v2358_v21 = vpack.c.bf16 %v1049_v53, %v1043_v51 }
 0x3b4   : > { %v1162_v23 = vpop.f32.mrb[18].mxu1  ;;  %2359 = vmatprep.subr.bf16.mxu0 %v2358_v21 }
 0x3b5   : > { %v1164_v54 = vpop.f32.mrb[19].mxu1  ;;  %2361 = vmatpush1.bf16.msra.mxu0 %v2360_v62  ;;  %2496 = vrcp.f32 %v1162_v23 }
 0x3bf   : > { %v2497_v30 = vpop.eup %2496 }
 0x3c0   : > { %v1255_v56 = vrot.slane %v2497_v30, %v3157_v33 }
 0x3c4   : > { %v1233_v31 = vpop.f32.mrb[20].mxu1 }
 0x3c5   : > { %v1256_v15 = vmul.f32 %v1255_v56, %v1233_v31  ;;  %v1235_v34 = vpop.f32.mrb[21].mxu1 }
 0x3c7   : > { %2239 = vmatmul.mubr.msk.f32.vlgmr.msra.gmra.mrb[28].mxu1 %vm950_vm2, %v1256_v15 }
 0x3c8   : > { %2309 = vmatpush1.bf16.xpose.msra.mxu1 %v3097_v17  ;;  %v1238_v4 = vpop.f32.mrb[22].mxu1  ;;  %1342 = vmatprep.mubr.f32.mxu1 %v3411_v8 }
 0x3c9   : > { %v1257_v10 = vmul.f32 %v1255_v56, %v1238_v4  ;;  %2311 = vmatprep.subr.bf16.mxu1 %v3123_v32  ;;  %v1240_v40 = vpop.f32.mrb[23].mxu1  ;;  %v3439_v4 = vld [vmem:[#allocation23_spill] sm:$0xff] }
 0x3cb   : > { %2240 = vmatmul.mubr.msk.f32.gmra.mrb[30].mxu1 %vm950_vm2, %v1257_v10  ;;  %v3440_v10 = vld [vmem:[#allocation21_spill] sm:$0xff] }
 0x3cc   : > { %v1243_v43 = vpop.f32.mrb[24].mxu1  ;;  %1348 = vmatprep.mubr.f32.mxu1 %v3411_v8  ;;  %v3441_v40 = vpack.c.bf16 %v3439_v4, %v3440_v10 }
 0x3cd   : > { %v1258_v48 = vmul.f32 %v1255_v56, %v1243_v43  ;;  %v1245_v50 = vpop.f32.mrb[25].mxu1  ;;  %v3443_v43 = vld [vmem:[#allocation20_spill] sm:$0xff] }
 0x3ce   : > { %v3445_v50 = vld [vmem:[#allocation27_spill] sm:$0xff] }
 0x3cf   : > { %2241 = vmatmul.mubr.msk.f32.gmra.mrb[32].mxu1 %vm950_vm2, %v1258_v48 }
 0x3d0   : > { %2313 = vmatpush1.bf16.xpose.msra.mxu1 %v3118_v18  ;;  %v1248_v36 = vpop.f32.mrb[26].mxu1  ;;  %1354 = vmatprep.mubr.f32.mxu1 %v3411_v8 }
 0x3d1   : > { %v1259_v42 = vmul.f32 %v1255_v56, %v1248_v36  ;;  %2315 = vmatprep.subr.bf16.mxu1 %v3101_v24  ;;  %v1250_v44 = vpop.f32.mrb[27].mxu1  ;;  %v3430_v24 = vld [vmem:[#allocation14_spill] sm:$0xff]  ;;  %v3446_v36 = vld [vmem:[#allocation25_spill] sm:$0xff] }
 0x3d2   : > { %v3432_v25 = vpack.c.bf16 %v3430_v24, %v3431_v9 }
 0x3d3   : > { %2242 = vmatmul.mubr.msk.f32.gmra.mrb[34].mxu1 %vm950_vm2, %v1259_v42  ;;  %v3449_v42 = vld [vmem:[#allocation24_spill] sm:$0xff] }
 0x3d4   : > { %1469 = vmatprep.mubr.f32.mxu1 %v3412_v2 }
 0x3d7   : > { %1470 = vmatmul.mubr.f32.vlgmr.msra.gmra.mrb[36].mxu1 %v3412_v2 }
 0x3d8   : > { %2317 = vmatpush1.bf16.xpose.msra.mxu1 %v3097_v17  ;;  %1540 = vmatprep.mubr.f32.mxu1 %v3192_v55  ;;  %v3434_v17 = vld [vmem:[#allocation17_spill] sm:$0xff] }
 0x3d9   : > { %2319 = vmatprep.subr.bf16.mxu1 %v3123_v32  ;;  %v3435_v41 = vpack.c.bf16 %v3433_v39, %v3434_v17  ;;  %v3436_v32 = vld [vmem:[#allocation18_spill] sm:$0xff] }
 0x3e0   : > { %2321 = vmatpush1.bf16.xpose.msra.mxu1 %v3118_v18  ;;  %v3437_v18 = vld [vmem:[#allocation16_spill] sm:$0xff] }
 0x3e1   : > { %2323 = vmatprep.subr.bf16.mxu1 %v3429_v12  ;;  %v3438_v14 = vpack.c.bf16 %v3436_v32, %v3437_v18 }
 0x3e7   : > { %1541 = vmatmul.mubr.f32.vlgmr.msra.gmra.mrb[38].mxu1 %v3190_v52  ;;  %v741_v52 = vpop.f32.mrb[93].mxu0 }
 0x3e8   : > { %2325 = vmatpush1.bf16.msra.mxu1 %v3432_v25  ;;  %1545 = vmatprep.mubr.f32.mxu1 %v3196_v38  ;;  %v745_v55 = vpop.f32.mrb[94].mxu0 }
 0x3e9   : > { %2327 = vmatprep.subr.bf16.mxu1 %v3435_v41 }
 0x3eb   : > { %1546 = vmatmul.mubr.f32.gmra.mrb[40].mxu1 %v3194_v28  ;;  %v747_v28 = vpop.f32.mrb[95].mxu0 }
 0x3ec   : > { %2329 = vmatpush1.bf16.msra.mxu1 %v3438_v14  ;;  %1550 = vmatprep.mubr.f32.mxu1 %v3200_v45 }
 0x3ed   : > { %2331 = vmatprep.subr.bf16.mxu1 %v3131_v57 }
 0x3ef   : > { %1551 = vmatmul.mubr.f32.gmra.mrb[42].mxu1 %v3198_v27 }
 0x3f0   : > { %1555 = vmatprep.mubr.f32.mxu1 %v3204_v16 }
 0x3f3   : > { %1556 = vmatmul.mubr.f32.gmra.mrb[44].mxu1 %v3202_v47 }
 0x3f4   : > { %1645 = vmatprep.mubr.f32.mxu1 %v3411_v8 }
 0x49a   : > { %v1338_v38 = vpop.f32.mrb[28].mxu1 }
 0x49b   : > { %v1340_v45 = vpop.f32.mrb[29].mxu1 }
 0x49e   : > { %v1344_v19 = vpop.f32.mrb[30].mxu1 }
 0x49f   : > { %v2364_v3 = vpack.c.bf16 %v1344_v19, %v1338_v38  ;;  %v1346_v5 = vpop.f32.mrb[31].mxu1 }
 0x4a0   : > { %v2362_v27 = vpack.c.bf16 %v1346_v5, %v1340_v45 }
 0x4a2   : > { %v1350_v13 = vpop.f32.mrb[32].mxu1  ;;  %2363 = vmatprep.subr.bf16.mxu0 %v2362_v27  ;;  %v2091_v27 = vld [vmem:[%s3359_s3] sm:$0xf] }
 0x4a3   : > { %v1352_v16 = vpop.f32.mrb[33].mxu1  ;;  %2365 = vmatpush1.bf16.msra.mxu0 %v2364_v3 }
 0x4a6   : > { %v1356_v47 = vpop.f32.mrb[34].mxu1 }
 0x4a7   : > { %v2368_v26 = vpack.c.bf16 %v1356_v47, %v1350_v13  ;;  %v1358_v29 = vpop.f32.mrb[35].mxu1  ;;  %v2568_v13 = vmov 0  }
 0x4a8   : > { %v2366_v59 = vpack.c.bf16 %v1358_v29, %v1352_v16  ;;  %2428 = vset.pattern.permute.xlu0 %v2568_v13 }
 0x4a9   : > { %2094 = vperm.xlu0 %2428, %v2091_v27  }
 0x4aa   : > { %v1471_v58 = vpop.f32.mrb[36].mxu1  ;;  %2367 = vmatprep.subr.bf16.mxu0 %v2366_v59 }
 0x4ab   : > { %v1473_v7 = vpop.f32.mrb[37].mxu1  ;;  %2369 = vmatpush1.bf16.msra.mxu0 %v2368_v26  ;;  %2498 = vrcp.f32 %v1471_v58 }
 0x4b5   : > { %v2499_v20 = vpop.eup %2498 }
 0x4b6   : > { %v1564_v0 = vrot.slane %v2499_v20, %v3157_v33 }
 0x4ba   : > { %v1542_v51 = vpop.f32.mrb[38].mxu1 }
 0x4bb   : > { %v1565_v60 = vmul.f32 %v1564_v0, %v1542_v51  ;;  %v1544_v62 = vpop.f32.mrb[39].mxu1 }
 0x4bc   : > { %v1987_v62 = vld [vmem:[%s3358_s2] sm:$0xf] }
 0x4bd   : > { %2243 = vmatmul.mubr.msk.f32.vlgmr.msra.gmra.mrb[46].mxu1 %vm950_vm2, %v1565_v60 }
 0x4be   : > { %2333 = vmatpush1.bf16.xpose.msra.mxu1 %v3129_v35  ;;  %v1547_v53 = vpop.f32.mrb[40].mxu1  ;;  %1651 = vmatprep.mubr.f32.mxu1 %v3411_v8 }
 0x4bf   : > { %v1566_v21 = vmul.f32 %v1564_v0, %v1547_v53  ;;  %2335 = vmatprep.subr.bf16.mxu1 %v3135_v6  ;;  %v1549_v23 = vpop.f32.mrb[41].mxu1 }
 0x4c1   : > { %2244 = vmatmul.mubr.msk.f32.gmra.mrb[48].mxu1 %vm950_vm2, %v1566_v21 }
 0x4c2   : > { %v1552_v54 = vpop.f32.mrb[42].mxu1  ;;  %1657 = vmatprep.mubr.f32.mxu1 %v3411_v8 }
 0x4c3   : > { %v1567_v30 = vmul.f32 %v1564_v0, %v1552_v54  ;;  %v1554_v56 = vpop.f32.mrb[43].mxu1 }
 0x4c5   : > { %2245 = vmatmul.mubr.msk.f32.gmra.mrb[50].mxu1 %vm950_vm2, %v1567_v30 }
 0x4c6   : > { %2337 = vmatpush1.bf16.xpose.msra.mxu1 %v3133_v1  ;;  %v1557_v31 = vpop.f32.mrb[44].mxu1  ;;  %1663 = vmatprep.mubr.f32.mxu1 %v3411_v8 }
 0x4c7   : > { %v1568_v15 = vmul.f32 %v1564_v0, %v1557_v31  ;;  %2339 = vmatprep.subr.bf16.mxu1 %v3131_v57  ;;  %v1559_v34 = vpop.f32.mrb[45].mxu1  ;;  %v3442_v57 = vld [vmem:[#allocation22_spill] sm:$0xff] }
 0x4c8   : > { %v3444_v48 = vpack.c.bf16 %v3442_v57, %v3443_v43 }
 0x4c9   : > { %2246 = vmatmul.mubr.msk.f32.gmra.mrb[52].mxu1 %vm950_vm2, %v1568_v15 }
 0x4ca   : > { %1778 = vmatprep.mubr.f32.mxu1 %v3412_v2 }
 0x4cd   : > { %1779 = vmatmul.mubr.f32.vlgmr.msra.gmra.mrb[54].mxu1 %v3412_v2  ;;  %v3447_v2 = vpack.c.bf16 %v3445_v50, %v3446_v36 }
 0x4ce   : > { %2341 = vmatpush1.bf16.xpose.msra.mxu1 %v3129_v35  ;;  %1849 = vmatprep.mubr.f32.mxu1 %v729_v46  ;;  %v3448_v35 = vld [vmem:[#allocation26_spill] sm:$0xff] }
 0x4cf   : > { %2343 = vmatprep.subr.bf16.mxu1 %v3135_v6  ;;  %v3450_v6 = vpack.c.bf16 %v3448_v35, %v3449_v42 }
 0x4d6   : > { %2345 = vmatpush1.bf16.xpose.msra.mxu1 %v3133_v1 }
 0x4d7   : > { %2347 = vmatprep.subr.bf16.mxu1 %v3441_v40 }
 0x4dd   : > { %1850 = vmatmul.mubr.f32.vlgmr.msra.gmra.mrb[56].mxu1 %v727_v11 }
 0x4de   : > { %2349 = vmatpush1.bf16.msra.mxu1 %v3444_v48  ;;  %1854 = vmatprep.mubr.f32.mxu1 %v735_v49 }
 0x4df   : > { %2351 = vmatprep.subr.bf16.mxu1 %v3447_v2 }
 0x4e1   : > { %1855 = vmatmul.mubr.f32.gmra.mrb[58].mxu1 %v733_v63 }
 0x4e2   : > { %2353 = vmatpush1.bf16.msra.mxu1 %v3450_v6  ;;  %1859 = vmatprep.mubr.f32.mxu1 %v741_v52 }
 0x4e5   : > { %1860 = vmatmul.mubr.f32.gmra.mrb[60].mxu1 %v739_v61 }
 0x4e6   : > { %1864 = vmatprep.mubr.f32.mxu1 %v747_v28 }
 0x4e9   : > { %1865 = vmatmul.mubr.f32.gmra.mrb[62].mxu1 %v745_v55 }
 0x4ea   : > { %1954 = vmatprep.mubr.f32.mxu1 %v3411_v8 }
 0x528   : > { %v2095_v53 = vpop.permute.xlu0 %2094 }
 0x590   : > { %v1647_v1 = vpop.f32.mrb[46].mxu1 }
 0x591   : > { %v1649_v44 = vpop.f32.mrb[47].mxu1 }
 0x594   : > { %v1653_v37 = vpop.f32.mrb[48].mxu1 }
 0x595   : > { %v2372_v22 = vpack.c.bf16 %v1653_v37, %v1647_v1  ;;  %v1655_v12 = vpop.f32.mrb[49].mxu1 }
 0x596   : > { %v2370_v24 = vpack.c.bf16 %v1655_v12, %v1649_v44 }
 0x598   : > { %v1659_v9 = vpop.f32.mrb[50].mxu1  ;;  %2371 = vmatprep.subr.bf16.mxu0 %v2370_v24 }
 0x599   : > { %v1661_v25 = vpop.f32.mrb[51].mxu1  ;;  %2373 = vmatpush1.bf16.msra.mxu0 %v2372_v22 }
 0x59c   : > { %v1665_v39 = vpop.f32.mrb[52].mxu1 }
 0x59d   : > { %v2376_v17 = vpack.c.bf16 %v1665_v39, %v1659_v9  ;;  %v1667_v41 = vpop.f32.mrb[53].mxu1 }
 0x59e   : > { %v2374_v32 = vpack.c.bf16 %v1667_v41, %v1661_v25 }
 0x5a0   : > { %v1780_v18 = vpop.f32.mrb[54].mxu1  ;;  %2375 = vmatprep.subr.bf16.mxu0 %v2374_v32 }
 0x5a1   : > { %v1782_v14 = vpop.f32.mrb[55].mxu1  ;;  %2377 = vmatpush1.bf16.msra.mxu0 %v2376_v17  ;;  %2500 = vrcp.f32 %v1780_v18 }
 0x5ab   : > { %v2501_v11 = vpop.eup %2500 }
 0x5ac   : > { %v1873_v46 = vrot.slane %v2501_v11, %v3157_v33 }
 0x5b0   : > { %v1851_v63 = vpop.f32.mrb[56].mxu1 }
 0x5b1   : > { %v1874_v49 = vmul.f32 %v1873_v46, %v1851_v63  ;;  %v1853_v61 = vpop.f32.mrb[57].mxu1 }
 0x5b3   : > { %2247 = vmatmul.mubr.msk.f32.vlgmr.msra.gmra.mrb[64].mxu1 %vm950_vm2, %v1874_v49 }
 0x5b4   : > { %v1856_v52 = vpop.f32.mrb[58].mxu1  ;;  %1960 = vmatprep.mubr.f32.mxu1 %v3411_v8 }
 0x5b5   : > { %v1875_v55 = vmul.f32 %v1873_v46, %v1856_v52  ;;  %v1858_v28 = vpop.f32.mrb[59].mxu1 }
 0x5b7   : > { %2248 = vmatmul.mubr.msk.f32.gmra.mrb[66].mxu1 %vm950_vm2, %v1875_v55 }
 0x5b8   : > { %v1861_v38 = vpop.f32.mrb[60].mxu1  ;;  %1966 = vmatprep.mubr.f32.mxu1 %v3411_v8 }
 0x5b9   : > { %v1876_v45 = vmul.f32 %v1873_v46, %v1861_v38  ;;  %v1863_v19 = vpop.f32.mrb[61].mxu1 }
 0x5bb   : > { %2249 = vmatmul.mubr.msk.f32.gmra.mrb[68].mxu1 %vm950_vm2, %v1876_v45 }
 0x5bc   : > { %v1866_v33 = vpop.f32.mrb[62].mxu1  ;;  %1972 = vmatprep.mubr.f32.mxu1 %v3411_v8 }
 0x5bd   : > { %v1877_v3 = vmul.f32 %v1873_v46, %v1866_v33  ;;  %v1868_v5 = vpop.f32.mrb[63].mxu1 }
 0x5bf   : > { %2250 = vmatmul.mubr.msk.f32.gmra.mrb[70].mxu1 %vm950_vm2, %v1877_v3 }
 0x686   : > { %v1956_v16 = vpop.f32.mrb[64].mxu1 }
 0x687   : > { %v1958_v47 = vpop.f32.mrb[65].mxu1 }
 0x68a   : > { %v1962_v26 = vpop.f32.mrb[66].mxu1 }
 0x68b   : > { %v2380_v29 = vpack.c.bf16 %v1962_v26, %v1956_v16  ;;  %v1964_v59 = vpop.f32.mrb[67].mxu1 }
 0x68c   : > { %v2378_v58 = vpack.c.bf16 %v1964_v59, %v1958_v47 }
 0x68e   : > { %v1968_v7 = vpop.f32.mrb[68].mxu1  ;;  %2379 = vmatprep.subr.bf16.mxu0 %v2378_v58 }
 0x68f   : > { %v1970_v8 = vpop.f32.mrb[69].mxu1  ;;  %2381 = vmatpush1.bf16.msra.mxu0 %v2380_v29 }
 0x692   : > { %v1974_v20 = vpop.f32.mrb[70].mxu1 }
 0x693   : > { %v2384_v0 = vpack.c.bf16 %v1974_v20, %v1968_v7  ;;  %v1976_v51 = vpop.f32.mrb[71].mxu1 }
 0x694   : > { %v2382_v60 = vpack.c.bf16 %v1976_v51, %v1970_v8 }
 0x696   : > { %2383 = vmatprep.subr.bf16.mxu0 %v2382_v60 }
 0x697   : > { %2385 = vmatpush1.bf16.msra.mxu0 %v2384_v0 }
 0x69a   : > { %2085 = vmatmul.mubr.f32.vlgmr.msra.gmra.mrb[96].mxu0 %v1987_v62 }
 0x76d   : > { %v2086_v21 = vpop.f32.mrb[96].mxu0 }
 0x76e   : > { %v2097_v23 = vadd.f32 %v2095_v53, %v2086_v21  ;;  %v2088_v54 = vpop.f32.mrb[97].mxu0 }
 0x76f   : > { %v2098_v30 = vadd.f32 %v2095_v53, %v2088_v54 }
 0x771   : > { %v2101_v56 = vcombine.low %v2097_v23, %v2098_v30 }
 0x773   : > { %2103 = vst [vmem:[%s190_s7] sm:$0xff] %v2101_v56 }
 0x774   : > { %2515 = shalt.err (!%p2512_p3)
}
 0x775   : > { %s2516_s22 = scalar_lea.hbm %s3314_s11, 128  ;;  %s2520_s28 = scalar_lea.hbm %s3360_s4, 256 }
 0x776   : > { %p2517_p4 = scmp.ne.s32.totalorder %s3314_s11, %s2516_s22  ;;  %p2521_p9 = scmp.lt.u32.totalorder %s3314_s11, %s3360_s4 }
 0x777   : > { %p2522_p10 = scmp.lt.u32.totalorder %s2520_s28, %s2516_s22  ;;  %p2524_p12 = scmp.lt.u32.totalorder %s2516_s22, %s3314_s11 }
 0x778   : > { %p2518_p7 = pnand %p2517_p4, %p2633_p5 }
 0x779   : > { %p2523_p11 = por %p2522_p10, %p2521_p9 }
 0x77a   : > { %p2519_p8 = pneg %p2518_p7 }
 0x77b   : > { %p2525_p13 = por %p2524_p12, %p2523_p11 }
 0x77d   : > { %p2526_p0 = pnand %p2525_p13, %p2519_p8 }
 0x77f   : > { %2529 = shalt.err (!%p2526_p0)
}
 0x780   : > { %2386 = dma.vmem_to_hbm [thread:$0]  (%p2633_p5), %s3316_s8, 128, %s3314_s11, %s2105_s12  }
 0x781 PF: > { %p2392_p1 = scmp.ge.s32.totalorder %s2564_s18, 2  ;;  %s2131_s5 = sand.u32 1, %s2552_s15  }
 0x782   : > { %s2132_s6 = scalar_lea.sflag [#allocation4], %s2131_s5 }
 0x783   : > { %p2389_p2 = pnand %p2392_p1, %p2637_p6 }
 0x785   : > { %2547 = dma.done.wait (!%p2389_p2), %s2132_s6, 128  }
 0x786   : > { %2549 = vsyncadd (!%p2389_p2), %s2132_s6, 4294967168  ;;  %p14_p3 = scmp.ge.s32.totalorder %s2620_s21, 4   ;;  %s3451_s15 = smov %s2556_s16 }
 0x787   : > { %s3452_s16 = smov %s2560_s17  ;;  %s3453_s17 = smov %s2631_s24 }
 0x788   : > { %s3454_s18 = smov %s2620_s21  ;;  %16 = sbr.rel (!%p14_p3) target bundleno = 3 (0x3), region = 71 }
 0x78f   :  { %2137 = vsyncpa [#allocation4], 1 }
 0x790   :  { %2139 = vsyncpa [#allocation4 + $0x1], 1 }

</bundles_post_ra>
